<compile_context>
chip_gen: v6e
topology: v6e:2x2x1
jax: 0.10.0
libtpu: 0.0.40
codegen_flags: <defaults>
</compile_context>

<pallas_src>
import functools

import jax
import jax.numpy as jnp
from jax.experimental import pallas as pl


# ----------------------------------------------------------------------------
# Init-time helpers: dense (Toeplitz) conv matrices and the packed weight blob.
# ----------------------------------------------------------------------------
def _conv_to_dense(w, in_h, in_w, stride):
    """PyTorch Conv2d weight (Cout, Cin, KH, KW) -> dense matrix D such that
    y_flat[n, cout*OH*OW + oh*OW + ow] = sum_row x_flat[n, row] * D[row, col],
    with x_flat flattened in (cin, ih, iw) C order (= PyTorch layout)."""
    cout, cin, kh, kw = w.shape
    oh = (in_h - kh) // stride + 1
    ow = (in_w - kw) // stride + 1
    co, ci, ikh, ikw, ioh, iow = jnp.meshgrid(
        jnp.arange(cout), jnp.arange(cin), jnp.arange(kh), jnp.arange(kw),
        jnp.arange(oh), jnp.arange(ow), indexing="ij")
    rows = ci * (in_h * in_w) + (ioh * stride + ikh) * in_w + (iow * stride + ikw)
    cols = co * (oh * ow) + ioh * ow + iow
    dense = jnp.zeros((cin * in_h * in_w, cout * oh * ow), jnp.float32)
    dense = dense.at[rows.ravel(), cols.ravel()].set(
        w[co, ci, ikh, ikw].ravel().astype(jnp.float32))
    return dense, oh, ow


def _pack_blob(sections):
    """Pack (name, 2-D array) sections into one f32 blob.  Every section
    starts at a sublane-aligned (multiple-of-8) row offset; columns are padded
    to the common multiple-of-128 width.  Returns (blob, {name: (row, nr, nc)})."""
    width = max(int(a.shape[1]) for _, a in sections)
    width = ((width + 127) // 128) * 128
    offs, parts, row = {}, [], 0
    for name, a in sections:
        a = jnp.asarray(a, jnp.float32)
        nr, nc = int(a.shape[0]), int(a.shape[1])
        offs[name] = (row, nr, nc)
        pad_r = (-nr) % 8
        parts.append(jnp.pad(a, ((0, pad_r), (0, width - nc))))
        row += nr + pad_r
    return jnp.concatenate(parts, axis=0), offs


def init_params(key, action_size, num_layers, hidden=32):
    ks = jax.random.split(key, 10 + 3 * num_layers)
    s = 0.1
    # Conv weights in PyTorch layout, then densified (Toeplitz form).
    w1 = s * jax.random.normal(ks[0], (4, 1, 8, 8), jnp.float32)
    b1 = s * jax.random.normal(ks[1], (4,), jnp.float32)
    w2 = s * jax.random.normal(ks[2], (8, 4, 4, 4), jnp.float32)
    b2 = s * jax.random.normal(ks[3], (8,), jnp.float32)
    d1, oh1, ow1 = _conv_to_dense(w1, 36, 36, 4)            # (1296, 256)
    d2, oh2, ow2 = _conv_to_dense(w2, oh1, ow1, 2)          # (256, 72)
    flat = 8 * oh2 * ow2                                    # 72 = conv2 C*H*W
    sections = [
        ("d1", d1), ("b1", jnp.repeat(b1, oh1 * ow1)[None, :]),
        ("d2", d2), ("b2", jnp.repeat(b2, oh2 * ow2)[None, :]),
        ("ffc1_w", s * jax.random.normal(ks[4], (flat, hidden), jnp.float32)),
        ("ffc1_b", s * jax.random.normal(ks[5], (1, hidden), jnp.float32)),
        ("pfc1_w", s * jax.random.normal(ks[6], (2, hidden), jnp.float32)),
        ("pfc1_b", s * jax.random.normal(ks[7], (1, hidden), jnp.float32)),
    ]
    for layer in range(num_layers):
        inp = 2 * hidden if layer == 0 else hidden
        kk = ks[10 + 3 * layer:13 + 3 * layer]
        sections += [
            (f"wih_{layer}",
             s * jax.random.normal(kk[0], (inp, 4 * hidden), jnp.float32)),
            (f"whh_{layer}",
             s * jax.random.normal(kk[1], (hidden, 4 * hidden), jnp.float32)),
            # single fused bias == b_ih + b_hh (mathematically identical)
            (f"b_{layer}",
             s * jax.random.normal(kk[2], (1, 4 * hidden), jnp.float32)),
        ]
    sections += [
        # merged head: column 0 = fc_val, columns 1.. = fc_pol
        ("head_w",
         s * jax.random.normal(ks[8], (hidden, 1 + action_size), jnp.float32)),
        ("head_b",
         s * jax.random.normal(ks[9], (1, 1 + action_size), jnp.float32)),
    ]
    blob, offs = _pack_blob(sections)
    return {"blob": blob, "offs": offs,
            "cfg": {"H": hidden, "L": num_layers, "A": action_size}}


# ----------------------------------------------------------------------------
# The single fused kernel: conv stack + FCs + wavefront LSTM + heads.
# ----------------------------------------------------------------------------
def _ppo_lstm_kernel(frame_ref, pose_ref, h_in_ref, c_in_ref, blob_ref,
                     val_ref, pol_ref, h_out_ref, c_out_ref,
                     *, T, B, H, L, A, offs):
    f32 = jnp.float32

    def sec(name):
        row, nrows, ncols = offs[name]
        return blob_ref[pl.ds(row, nrows), pl.ds(0, ncols)]

    def gemm(x, w):
        return jnp.dot(x, w, preferred_element_type=f32)

    # --- conv stack (dense Toeplitz GEMMs) + frame_fc1 + pose_fc1 ------------
    y1 = jnp.maximum(gemm(frame_ref[...], sec("d1")) + sec("b1"), 0.0)   # (TB,256)
    y2 = jnp.maximum(gemm(y1, sec("d2")) + sec("b2"), 0.0)               # (TB, 72)
    out1 = jnp.maximum(gemm(y2, sec("ffc1_w")) + sec("ffc1_b"), 0.0)     # (TB, H)
    out2 = jnp.maximum(gemm(pose_ref[...], sec("pfc1_w")) + sec("pfc1_b"), 0.0)

    # --- hoisted layer-0 input projection; concat([out1,out2]) is folded by
    #     splitting W_ih rows: x @ W_ih = out1 @ W_ih[:H] + out2 @ W_ih[H:2H]
    r0, _, nc0 = offs["wih_0"]
    gx0 = (gemm(out1, blob_ref[pl.ds(r0, H), pl.ds(0, nc0)])
           + gemm(out2, blob_ref[pl.ds(r0 + H, H), pl.ds(0, nc0)])
           + sec("b_0"))                                                 # (TB,4H)

    # --- packed recurrent RHS: [whh_0 | ... | whh_{L-1} | wih_1 | ... ] ------
    w_rec = jnp.concatenate([sec(f"whh_{l}") for l in range(L)]
                            + [sec(f"wih_{l}") for l in range(1, L)], axis=1)
    bias = {l: sec(f"b_{l}") for l in range(1, L)}

    # Gate lane masks (hoisted): lanes [2H, 3H) are the "g" gate -> tanh; the
    # rest use sigmoid(x) = 0.5*(1 + tanh(x/2)) so ONE tanh covers all gates.
    lane = jax.lax.broadcasted_iota(jnp.int32, (B, 4 * H), 1)
    is_g = jnp.logical_and(lane >= 2 * H, lane < 3 * H)
    mul = jnp.where(is_g, 1.0, 0.5).astype(f32)
    add = jnp.where(is_g, 0.0, 0.5).astype(f32)

    h = [h_in_ref[l, :, :] for l in range(L)]
    c = [c_in_ref[l, :, :] for l in range(L)]
    out_rows = []

    # --- wavefront over (timestep, layer): T+L-1 serial rounds; one packed
    #     MXU push per round covers every active layer's recurrent GEMM and
    #     every layer>0 input projection (blocks selected statically). --------
    for s in range(T + L - 1):
        hstack = jnp.concatenate(h, axis=0)                  # (L*B, H)
        big = gemm(hstack, w_rec)                            # (L*B, (2L-1)*4H)
        new_h, new_c = {}, {}
        for l in range(L):
            t = s - l
            if t < 0 or t >= T:
                continue
            gates = big[l * B:(l + 1) * B, l * 4 * H:(l + 1) * 4 * H]
            if l == 0:
                gates = gates + gx0[t * B:(t + 1) * B, :]
            else:
                gates = (gates
                         + big[(l - 1) * B:l * B,
                               (L - 1 + l) * 4 * H:(L + l) * 4 * H]
                         + bias[l])
            act = jnp.tanh(gates * mul) * mul + add          # i,f,o: sigmoid; g: tanh
            i_g = act[:, 0 * H:1 * H]
            f_g = act[:, 1 * H:2 * H]
            g_g = act[:, 2 * H:3 * H]
            o_g = act[:, 3 * H:4 * H]
            c_n = f_g * c[l] + i_g * g_g
            h_n = o_g * jnp.tanh(c_n)
            new_h[l], new_c[l] = h_n, c_n
            if l == L - 1:
                out_rows.append(h_n)                         # time order
        for l, v in new_h.items():
            h[l] = v
        for l, v in new_c.items():
            c[l] = v

    for l in range(L):
        h_out_ref[l, :, :] = h[l]
        c_out_ref[l, :, :] = c[l]

    # --- merged value/policy head + softmax (exact division) ----------------
    seq = jnp.concatenate(out_rows, axis=0)                  # (TB, H)
    logits = gemm(seq, sec("head_w")) + sec("head_b")        # (TB, 1+A)
    val_ref[...] = logits[:, 0:1]
    p = logits[:, 1:1 + A]
    p = p - jnp.max(p, axis=-1, keepdims=True)
    e = jnp.exp(p)
    pol_ref[...] = e / jnp.sum(e, axis=-1, keepdims=True)


# ----------------------------------------------------------------------------
# Full forward pass (only free reshapes happen outside the kernel).
# ----------------------------------------------------------------------------
def ppo_lstm_forward(params, frame, robot_pose, h_in, c_in):
    # frame: (T, B, 1, 36, 36), robot_pose: (T, B, 2), h_in/c_in: (L, B, H)
    cfg = params["cfg"]
    H, L, A = cfg["H"], cfg["L"], cfg["A"]
    T, B = frame.shape[0], frame.shape[1]
    TB = T * B
    frame_flat = frame.reshape(TB, frame.shape[2] * frame.shape[3] * frame.shape[4])
    pose = robot_pose.reshape(TB, robot_pose.shape[-1])

    kernel = functools.partial(_ppo_lstm_kernel, T=T, B=B, H=H, L=L, A=A,
                               offs=params["offs"])
    val, pol, h_out, c_out = pl.pallas_call(
        kernel,
        out_shape=(
            jax.ShapeDtypeStruct((TB, 1), jnp.float32),
            jax.ShapeDtypeStruct((TB, A), jnp.float32),
            jax.ShapeDtypeStruct((L, B, H), jnp.float32),
            jax.ShapeDtypeStruct((L, B, H), jnp.float32),
        ),
    )(frame_flat, pose, h_in, c_in, params["blob"])
    return val.reshape(T, B, 1), pol.reshape(T, B, A), h_out, c_out


if __name__ == "__main__":
    action_size = 5
    num_layers = 2
    T, B, hidden = 4, 2, 32

    key = jax.random.PRNGKey(0)
    k_params, k_frame, k_pose, k_h, k_c = jax.random.split(key, 5)

    params = init_params(k_params, action_size, num_layers, hidden)

    frame = jax.random.normal(k_frame, (T, B, 1, 36, 36), dtype=jnp.float32)
    robot_pose = jax.random.normal(k_pose, (T, B, 2), dtype=jnp.float32)
    h_in = jax.random.normal(k_h, (num_layers, B, hidden), dtype=jnp.float32)
    c_in = jax.random.normal(k_c, (num_layers, B, hidden), dtype=jnp.float32)

    fwd = jax.jit(functools.partial(ppo_lstm_forward, params))
    val, pol, h_out, c_out = fwd(frame, robot_pose, h_in, c_in)
    jax.block_until_ready((val, pol, h_out, c_out))

    assert val.shape == (T, B, 1)
    assert pol.shape == (T, B, action_size)
    assert h_out.shape == (num_layers, B, hidden)
    assert c_out.shape == (num_layers, B, hidden)
    # softmax rows sum to 1 (exact division used in-kernel)
    assert jnp.allclose(jnp.sum(pol, axis=2), 1.0, atol=1e-5)
    assert bool(jnp.all(jnp.isfinite(val))) and bool(jnp.all(jnp.isfinite(pol)))

    print("KERNEL_OK")
</pallas_src>

<mosaic_0001>
module attributes {stable_mosaic.version = 11 : i64} {
  func.func @_ppo_lstm_kernel(%arg0: memref<8x1296xf32, #tpu.memory_space<vmem>>, %arg1: memref<8x2xf32, #tpu.memory_space<vmem>>, %arg2: memref<2x2x32xf32, #tpu.memory_space<vmem>>, %arg3: memref<2x2x32xf32, #tpu.memory_space<vmem>>, %arg4: memref<1880x256xf32, #tpu.memory_space<vmem>>, %arg5: memref<8x1xf32, #tpu.memory_space<vmem>>, %arg6: memref<8x5xf32, #tpu.memory_space<vmem>>, %arg7: memref<2x2x32xf32, #tpu.memory_space<vmem>>, %arg8: memref<2x2x32xf32, #tpu.memory_space<vmem>>) attributes {dimension_semantics = [], scalar_prefetch = 0 : i64, scratch_operands = 0 : i64, tpu.core_type = #tpu.core_type<tc>} {
    %c0 = arith.constant 0 : index
    %c0_0 = arith.constant 0 : index
    %0 = vector.load %arg0[%c0, %c0_0] : memref<8x1296xf32, #tpu.memory_space<vmem>>, vector<8x1296xf32>
    %c0_1 = arith.constant 0 : index
    %c0_2 = arith.constant 0 : index
    %1 = vector.load %arg4[%c0_1, %c0_2] : memref<1880x256xf32, #tpu.memory_space<vmem>>, vector<1296x256xf32>
    %cst = arith.constant dense<0.000000e+00> : vector<8x256xf32>
    %2 = tpu.matmul %0, %1, %cst {dimension_numbers = #tpu.dot_dimension_numbers<[1], [0], [0], [1], [0, 0, 1, 1], [], []>} : vector<8x1296xf32>, vector<1296x256xf32>, vector<8x256xf32> -> vector<8x256xf32>
    %c1296 = arith.constant 1296 : index
    %c0_3 = arith.constant 0 : index
    %3 = vector.load %arg4[%c1296, %c0_3] : memref<1880x256xf32, #tpu.memory_space<vmem>>, vector<1x256xf32>
    %4 = vector.broadcast %3 : vector<1x256xf32> to vector<8x256xf32>
    %5 = arith.addf %2, %4 : vector<8x256xf32>
    %cst_4 = arith.constant 0.000000e+00 : f32
    %6 = vector.broadcast %cst_4 : f32 to vector<8x256xf32>
    %7 = arith.maximumf %5, %6 : vector<8x256xf32>
    %c1304 = arith.constant 1304 : index
    %c0_5 = arith.constant 0 : index
    %8 = vector.load %arg4[%c1304, %c0_5] : memref<1880x256xf32, #tpu.memory_space<vmem>>, vector<256x72xf32>
    %cst_6 = arith.constant dense<0.000000e+00> : vector<8x72xf32>
    %9 = tpu.matmul %7, %8, %cst_6 {dimension_numbers = #tpu.dot_dimension_numbers<[1], [0], [0], [1], [0, 0, 1, 1], [], []>} : vector<8x256xf32>, vector<256x72xf32>, vector<8x72xf32> -> vector<8x72xf32>
    %c1560 = arith.constant 1560 : index
    %c0_7 = arith.constant 0 : index
    %10 = vector.load %arg4[%c1560, %c0_7] : memref<1880x256xf32, #tpu.memory_space<vmem>>, vector<1x72xf32>
    %11 = vector.broadcast %10 : vector<1x72xf32> to vector<8x72xf32>
    %12 = arith.addf %9, %11 : vector<8x72xf32>
    %cst_8 = arith.constant 0.000000e+00 : f32
    %13 = vector.broadcast %cst_8 : f32 to vector<8x72xf32>
    %14 = arith.maximumf %12, %13 : vector<8x72xf32>
    %c1568 = arith.constant 1568 : index
    %c0_9 = arith.constant 0 : index
    %15 = vector.load %arg4[%c1568, %c0_9] : memref<1880x256xf32, #tpu.memory_space<vmem>>, vector<72x32xf32>
    %cst_10 = arith.constant dense<0.000000e+00> : vector<8x32xf32>
    %16 = tpu.matmul %14, %15, %cst_10 {dimension_numbers = #tpu.dot_dimension_numbers<[1], [0], [0], [1], [0, 0, 1, 1], [], []>} : vector<8x72xf32>, vector<72x32xf32>, vector<8x32xf32> -> vector<8x32xf32>
    %c1640 = arith.constant 1640 : index
    %c0_11 = arith.constant 0 : index
    %17 = vector.load %arg4[%c1640, %c0_11] : memref<1880x256xf32, #tpu.memory_space<vmem>>, vector<1x32xf32>
    %18 = vector.broadcast %17 : vector<1x32xf32> to vector<8x32xf32>
    %19 = arith.addf %16, %18 : vector<8x32xf32>
    %cst_12 = arith.constant 0.000000e+00 : f32
    %20 = vector.broadcast %cst_12 : f32 to vector<8x32xf32>
    %21 = arith.maximumf %19, %20 : vector<8x32xf32>
    %c0_13 = arith.constant 0 : index
    %c0_14 = arith.constant 0 : index
    %22 = vector.load %arg1[%c0_13, %c0_14] : memref<8x2xf32, #tpu.memory_space<vmem>>, vector<8x2xf32>
    %c1648 = arith.constant 1648 : index
    %c0_15 = arith.constant 0 : index
    %23 = vector.load %arg4[%c1648, %c0_15] : memref<1880x256xf32, #tpu.memory_space<vmem>>, vector<2x32xf32>
    %cst_16 = arith.constant dense<0.000000e+00> : vector<8x32xf32>
    %24 = tpu.matmul %22, %23, %cst_16 {dimension_numbers = #tpu.dot_dimension_numbers<[1], [0], [0], [1], [0, 0, 1, 1], [], []>} : vector<8x2xf32>, vector<2x32xf32>, vector<8x32xf32> -> vector<8x32xf32>
    %c1656 = arith.constant 1656 : index
    %c0_17 = arith.constant 0 : index
    %25 = vector.load %arg4[%c1656, %c0_17] : memref<1880x256xf32, #tpu.memory_space<vmem>>, vector<1x32xf32>
    %26 = vector.broadcast %25 : vector<1x32xf32> to vector<8x32xf32>
    %27 = arith.addf %24, %26 : vector<8x32xf32>
    %cst_18 = arith.constant 0.000000e+00 : f32
    %28 = vector.broadcast %cst_18 : f32 to vector<8x32xf32>
    %29 = arith.maximumf %27, %28 : vector<8x32xf32>
    %c1664 = arith.constant 1664 : index
    %c0_19 = arith.constant 0 : index
    %30 = vector.load %arg4[%c1664, %c0_19] : memref<1880x256xf32, #tpu.memory_space<vmem>>, vector<32x128xf32>
    %cst_20 = arith.constant dense<0.000000e+00> : vector<8x128xf32>
    %31 = tpu.matmul %21, %30, %cst_20 {dimension_numbers = #tpu.dot_dimension_numbers<[1], [0], [0], [1], [0, 0, 1, 1], [], []>} : vector<8x32xf32>, vector<32x128xf32>, vector<8x128xf32> -> vector<8x128xf32>
    %c1696 = arith.constant 1696 : index
    %c0_21 = arith.constant 0 : index
    %32 = vector.load %arg4[%c1696, %c0_21] : memref<1880x256xf32, #tpu.memory_space<vmem>>, vector<32x128xf32>
    %cst_22 = arith.constant dense<0.000000e+00> : vector<8x128xf32>
    %33 = tpu.matmul %29, %32, %cst_22 {dimension_numbers = #tpu.dot_dimension_numbers<[1], [0], [0], [1], [0, 0, 1, 1], [], []>} : vector<8x32xf32>, vector<32x128xf32>, vector<8x128xf32> -> vector<8x128xf32>
    %34 = arith.addf %31, %33 : vector<8x128xf32>
    %c1760 = arith.constant 1760 : index
    %c0_23 = arith.constant 0 : index
    %35 = vector.load %arg4[%c1760, %c0_23] : memref<1880x256xf32, #tpu.memory_space<vmem>>, vector<1x128xf32>
    %36 = vector.broadcast %35 : vector<1x128xf32> to vector<8x128xf32>
    %37 = arith.addf %34, %36 : vector<8x128xf32>
    %c1728 = arith.constant 1728 : index
    %c0_24 = arith.constant 0 : index
    %38 = vector.load %arg4[%c1728, %c0_24] : memref<1880x256xf32, #tpu.memory_space<vmem>>, vector<32x128xf32>
    %c1800 = arith.constant 1800 : index
    %c0_25 = arith.constant 0 : index
    %39 = vector.load %arg4[%c1800, %c0_25] : memref<1880x256xf32, #tpu.memory_space<vmem>>, vector<32x128xf32>
    %c1768 = arith.constant 1768 : index
    %c0_26 = arith.constant 0 : index
    %40 = vector.load %arg4[%c1768, %c0_26] : memref<1880x256xf32, #tpu.memory_space<vmem>>, vector<32x128xf32>
    %41 = tpu.concatenate %38, %39, %40 in 1 : vector<32x128xf32>, vector<32x128xf32>, vector<32x128xf32> -> vector<32x384xf32>
    %c1832 = arith.constant 1832 : index
    %c0_27 = arith.constant 0 : index
    %42 = vector.load %arg4[%c1832, %c0_27] : memref<1880x256xf32, #tpu.memory_space<vmem>>, vector<1x128xf32>
    %43 = tpu.iota {dimensions = array<i32: 1>} : vector<2x128xi32>
    %c64_i32 = arith.constant 64 : i32
    %44 = vector.broadcast %c64_i32 : i32 to vector<2x128xi32>
    %45 = arith.cmpi sge, %43, %44 : vector<2x128xi32>
    %c96_i32 = arith.constant 96 : i32
    %46 = vector.broadcast %c96_i32 : i32 to vector<2x128xi32>
    %47 = arith.cmpi slt, %43, %46 : vector<2x128xi32>
    %48 = arith.andi %45, %47 : vector<2x128xi1>
    %cst_28 = arith.constant 1.000000e+00 : f32
    %cst_29 = arith.constant 5.000000e-01 : f32
    %49 = vector.broadcast %cst_28 : f32 to vector<2x128xf32>
    %50 = vector.broadcast %cst_29 : f32 to vector<2x128xf32>
    %51 = arith.select %48, %49, %50 : vector<2x128xi1>, vector<2x128xf32>
    %cst_30 = arith.constant 0.000000e+00 : f32
    %cst_31 = arith.constant 5.000000e-01 : f32
    %52 = vector.broadcast %cst_30 : f32 to vector<2x128xf32>
    %53 = vector.broadcast %cst_31 : f32 to vector<2x128xf32>
    %54 = arith.select %48, %52, %53 : vector<2x128xi1>, vector<2x128xf32>
    %c0_32 = arith.constant 0 : index
    %c0_33 = arith.constant 0 : index
    %c0_34 = arith.constant 0 : index
    %55 = vector.load %arg2[%c0_32, %c0_33, %c0_34] : memref<2x2x32xf32, #tpu.memory_space<vmem>>, vector<1x2x32xf32>
    %56 = vector.shape_cast %55 : vector<1x2x32xf32> to vector<2x32xf32>
    %c1 = arith.constant 1 : index
    %c0_35 = arith.constant 0 : index
    %c0_36 = arith.constant 0 : index
    %57 = vector.load %arg2[%c1, %c0_35, %c0_36] : memref<2x2x32xf32, #tpu.memory_space<vmem>>, vector<1x2x32xf32>
    %58 = vector.shape_cast %57 : vector<1x2x32xf32> to vector<2x32xf32>
    %c0_37 = arith.constant 0 : index
    %c0_38 = arith.constant 0 : index
    %c0_39 = arith.constant 0 : index
    %59 = vector.load %arg3[%c0_37, %c0_38, %c0_39] : memref<2x2x32xf32, #tpu.memory_space<vmem>>, vector<1x2x32xf32>
    %60 = vector.shape_cast %59 : vector<1x2x32xf32> to vector<2x32xf32>
    %c1_40 = arith.constant 1 : index
    %c0_41 = arith.constant 0 : index
    %c0_42 = arith.constant 0 : index
    %61 = vector.load %arg3[%c1_40, %c0_41, %c0_42] : memref<2x2x32xf32, #tpu.memory_space<vmem>>, vector<1x2x32xf32>
    %62 = vector.shape_cast %61 : vector<1x2x32xf32> to vector<2x32xf32>
    %63 = tpu.concatenate %56, %58 in 0 : vector<2x32xf32>, vector<2x32xf32> -> vector<4x32xf32>
    %cst_43 = arith.constant dense<0.000000e+00> : vector<4x384xf32>
    %64 = tpu.matmul %63, %41, %cst_43 {dimension_numbers = #tpu.dot_dimension_numbers<[1], [0], [0], [1], [0, 0, 1, 1], [], []>} : vector<4x32xf32>, vector<32x384xf32>, vector<4x384xf32> -> vector<4x384xf32>
    %65 = vector.extract_strided_slice %64 {offsets = [0, 0], sizes = [2, 128], strides = [1, 1]} : vector<4x384xf32> to vector<2x128xf32>
    %66 = vector.extract_strided_slice %37 {offsets = [0, 0], sizes = [2, 128], strides = [1, 1]} : vector<8x128xf32> to vector<2x128xf32>
    %67 = arith.addf %65, %66 : vector<2x128xf32>
    %68 = arith.mulf %67, %51 : vector<2x128xf32>
    %69 = math.tanh %68 : vector<2x128xf32>
    %70 = arith.mulf %69, %51 : vector<2x128xf32>
    %71 = arith.addf %70, %54 : vector<2x128xf32>
    %72 = vector.extract_strided_slice %71 {offsets = [0, 0], sizes = [2, 32], strides = [1, 1]} : vector<2x128xf32> to vector<2x32xf32>
    %73 = vector.extract_strided_slice %71 {offsets = [0, 32], sizes = [2, 32], strides = [1, 1]} : vector<2x128xf32> to vector<2x32xf32>
    %74 = vector.extract_strided_slice %71 {offsets = [0, 64], sizes = [2, 32], strides = [1, 1]} : vector<2x128xf32> to vector<2x32xf32>
    %75 = vector.extract_strided_slice %71 {offsets = [0, 96], sizes = [2, 32], strides = [1, 1]} : vector<2x128xf32> to vector<2x32xf32>
    %76 = arith.mulf %73, %60 : vector<2x32xf32>
    %77 = arith.mulf %72, %74 : vector<2x32xf32>
    %78 = arith.addf %76, %77 : vector<2x32xf32>
    %79 = math.tanh %78 : vector<2x32xf32>
    %80 = arith.mulf %75, %79 : vector<2x32xf32>
    %81 = tpu.concatenate %80, %58 in 0 : vector<2x32xf32>, vector<2x32xf32> -> vector<4x32xf32>
    %cst_44 = arith.constant dense<0.000000e+00> : vector<4x384xf32>
    %82 = tpu.matmul %81, %41, %cst_44 {dimension_numbers = #tpu.dot_dimension_numbers<[1], [0], [0], [1], [0, 0, 1, 1], [], []>} : vector<4x32xf32>, vector<32x384xf32>, vector<4x384xf32> -> vector<4x384xf32>
    %83 = vector.extract_strided_slice %82 {offsets = [0, 0], sizes = [2, 128], strides = [1, 1]} : vector<4x384xf32> to vector<2x128xf32>
    %84 = vector.extract_strided_slice %37 {offsets = [2, 0], sizes = [2, 128], strides = [1, 1]} : vector<8x128xf32> to vector<2x128xf32>
    %85 = arith.addf %83, %84 : vector<2x128xf32>
    %86 = arith.mulf %85, %51 : vector<2x128xf32>
    %87 = math.tanh %86 : vector<2x128xf32>
    %88 = arith.mulf %87, %51 : vector<2x128xf32>
    %89 = arith.addf %88, %54 : vector<2x128xf32>
    %90 = vector.extract_strided_slice %89 {offsets = [0, 0], sizes = [2, 32], strides = [1, 1]} : vector<2x128xf32> to vector<2x32xf32>
    %91 = vector.extract_strided_slice %89 {offsets = [0, 32], sizes = [2, 32], strides = [1, 1]} : vector<2x128xf32> to vector<2x32xf32>
    %92 = vector.extract_strided_slice %89 {offsets = [0, 64], sizes = [2, 32], strides = [1, 1]} : vector<2x128xf32> to vector<2x32xf32>
    %93 = vector.extract_strided_slice %89 {offsets = [0, 96], sizes = [2, 32], strides = [1, 1]} : vector<2x128xf32> to vector<2x32xf32>
    %94 = arith.mulf %91, %78 : vector<2x32xf32>
    %95 = arith.mulf %90, %92 : vector<2x32xf32>
    %96 = arith.addf %94, %95 : vector<2x32xf32>
    %97 = math.tanh %96 : vector<2x32xf32>
    %98 = arith.mulf %93, %97 : vector<2x32xf32>
    %99 = vector.extract_strided_slice %82 {offsets = [2, 128], sizes = [2, 128], strides = [1, 1]} : vector<4x384xf32> to vector<2x128xf32>
    %100 = vector.extract_strided_slice %82 {offsets = [0, 256], sizes = [2, 128], strides = [1, 1]} : vector<4x384xf32> to vector<2x128xf32>
    %101 = arith.addf %99, %100 : vector<2x128xf32>
    %102 = vector.broadcast %42 : vector<1x128xf32> to vector<2x128xf32>
    %103 = arith.addf %101, %102 : vector<2x128xf32>
    %104 = arith.mulf %103, %51 : vector<2x128xf32>
    %105 = math.tanh %104 : vector<2x128xf32>
    %106 = arith.mulf %105, %51 : vector<2x128xf32>
    %107 = arith.addf %106, %54 : vector<2x128xf32>
    %108 = vector.extract_strided_slice %107 {offsets = [0, 0], sizes = [2, 32], strides = [1, 1]} : vector<2x128xf32> to vector<2x32xf32>
    %109 = vector.extract_strided_slice %107 {offsets = [0, 32], sizes = [2, 32], strides = [1, 1]} : vector<2x128xf32> to vector<2x32xf32>
    %110 = vector.extract_strided_slice %107 {offsets = [0, 64], sizes = [2, 32], strides = [1, 1]} : vector<2x128xf32> to vector<2x32xf32>
    %111 = vector.extract_strided_slice %107 {offsets = [0, 96], sizes = [2, 32], strides = [1, 1]} : vector<2x128xf32> to vector<2x32xf32>
    %112 = arith.mulf %109, %62 : vector<2x32xf32>
    %113 = arith.mulf %108, %110 : vector<2x32xf32>
    %114 = arith.addf %112, %113 : vector<2x32xf32>
    %115 = math.tanh %114 : vector<2x32xf32>
    %116 = arith.mulf %111, %115 : vector<2x32xf32>
    %117 = tpu.concatenate %98, %116 in 0 : vector<2x32xf32>, vector<2x32xf32> -> vector<4x32xf32>
    %cst_45 = arith.constant dense<0.000000e+00> : vector<4x384xf32>
    %118 = tpu.matmul %117, %41, %cst_45 {dimension_numbers = #tpu.dot_dimension_numbers<[1], [0], [0], [1], [0, 0, 1, 1], [], []>} : vector<4x32xf32>, vector<32x384xf32>, vector<4x384xf32> -> vector<4x384xf32>
    %119 = vector.extract_strided_slice %118 {offsets = [0, 0], sizes = [2, 128], strides = [1, 1]} : vector<4x384xf32> to vector<2x128xf32>
    %120 = vector.extract_strided_slice %37 {offsets = [4, 0], sizes = [2, 128], strides = [1, 1]} : vector<8x128xf32> to vector<2x128xf32>
    %121 = arith.addf %119, %120 : vector<2x128xf32>
    %122 = arith.mulf %121, %51 : vector<2x128xf32>
    %123 = math.tanh %122 : vector<2x128xf32>
    %124 = arith.mulf %123, %51 : vector<2x128xf32>
    %125 = arith.addf %124, %54 : vector<2x128xf32>
    %126 = vector.extract_strided_slice %125 {offsets = [0, 0], sizes = [2, 32], strides = [1, 1]} : vector<2x128xf32> to vector<2x32xf32>
    %127 = vector.extract_strided_slice %125 {offsets = [0, 32], sizes = [2, 32], strides = [1, 1]} : vector<2x128xf32> to vector<2x32xf32>
    %128 = vector.extract_strided_slice %125 {offsets = [0, 64], sizes = [2, 32], strides = [1, 1]} : vector<2x128xf32> to vector<2x32xf32>
    %129 = vector.extract_strided_slice %125 {offsets = [0, 96], sizes = [2, 32], strides = [1, 1]} : vector<2x128xf32> to vector<2x32xf32>
    %130 = arith.mulf %127, %96 : vector<2x32xf32>
    %131 = arith.mulf %126, %128 : vector<2x32xf32>
    %132 = arith.addf %130, %131 : vector<2x32xf32>
    %133 = math.tanh %132 : vector<2x32xf32>
    %134 = arith.mulf %129, %133 : vector<2x32xf32>
    %135 = vector.extract_strided_slice %118 {offsets = [2, 128], sizes = [2, 128], strides = [1, 1]} : vector<4x384xf32> to vector<2x128xf32>
    %136 = vector.extract_strided_slice %118 {offsets = [0, 256], sizes = [2, 128], strides = [1, 1]} : vector<4x384xf32> to vector<2x128xf32>
    %137 = arith.addf %135, %136 : vector<2x128xf32>
    %138 = vector.broadcast %42 : vector<1x128xf32> to vector<2x128xf32>
    %139 = arith.addf %137, %138 : vector<2x128xf32>
    %140 = arith.mulf %139, %51 : vector<2x128xf32>
    %141 = math.tanh %140 : vector<2x128xf32>
    %142 = arith.mulf %141, %51 : vector<2x128xf32>
    %143 = arith.addf %142, %54 : vector<2x128xf32>
    %144 = vector.extract_strided_slice %143 {offsets = [0, 0], sizes = [2, 32], strides = [1, 1]} : vector<2x128xf32> to vector<2x32xf32>
    %145 = vector.extract_strided_slice %143 {offsets = [0, 32], sizes = [2, 32], strides = [1, 1]} : vector<2x128xf32> to vector<2x32xf32>
    %146 = vector.extract_strided_slice %143 {offsets = [0, 64], sizes = [2, 32], strides = [1, 1]} : vector<2x128xf32> to vector<2x32xf32>
    %147 = vector.extract_strided_slice %143 {offsets = [0, 96], sizes = [2, 32], strides = [1, 1]} : vector<2x128xf32> to vector<2x32xf32>
    %148 = arith.mulf %145, %114 : vector<2x32xf32>
    %149 = arith.mulf %144, %146 : vector<2x32xf32>
    %150 = arith.addf %148, %149 : vector<2x32xf32>
    %151 = math.tanh %150 : vector<2x32xf32>
    %152 = arith.mulf %147, %151 : vector<2x32xf32>
    %153 = tpu.concatenate %134, %152 in 0 : vector<2x32xf32>, vector<2x32xf32> -> vector<4x32xf32>
    %cst_46 = arith.constant dense<0.000000e+00> : vector<4x384xf32>
    %154 = tpu.matmul %153, %41, %cst_46 {dimension_numbers = #tpu.dot_dimension_numbers<[1], [0], [0], [1], [0, 0, 1, 1], [], []>} : vector<4x32xf32>, vector<32x384xf32>, vector<4x384xf32> -> vector<4x384xf32>
    %155 = vector.extract_strided_slice %154 {offsets = [0, 0], sizes = [2, 128], strides = [1, 1]} : vector<4x384xf32> to vector<2x128xf32>
    %156 = vector.extract_strided_slice %37 {offsets = [6, 0], sizes = [2, 128], strides = [1, 1]} : vector<8x128xf32> to vector<2x128xf32>
    %157 = arith.addf %155, %156 : vector<2x128xf32>
    %158 = arith.mulf %157, %51 : vector<2x128xf32>
    %159 = math.tanh %158 : vector<2x128xf32>
    %160 = arith.mulf %159, %51 : vector<2x128xf32>
    %161 = arith.addf %160, %54 : vector<2x128xf32>
    %162 = vector.extract_strided_slice %161 {offsets = [0, 0], sizes = [2, 32], strides = [1, 1]} : vector<2x128xf32> to vector<2x32xf32>
    %163 = vector.extract_strided_slice %161 {offsets = [0, 32], sizes = [2, 32], strides = [1, 1]} : vector<2x128xf32> to vector<2x32xf32>
    %164 = vector.extract_strided_slice %161 {offsets = [0, 64], sizes = [2, 32], strides = [1, 1]} : vector<2x128xf32> to vector<2x32xf32>
    %165 = vector.extract_strided_slice %161 {offsets = [0, 96], sizes = [2, 32], strides = [1, 1]} : vector<2x128xf32> to vector<2x32xf32>
    %166 = arith.mulf %163, %132 : vector<2x32xf32>
    %167 = arith.mulf %162, %164 : vector<2x32xf32>
    %168 = arith.addf %166, %167 : vector<2x32xf32>
    %169 = math.tanh %168 : vector<2x32xf32>
    %170 = arith.mulf %165, %169 : vector<2x32xf32>
    %171 = vector.extract_strided_slice %154 {offsets = [2, 128], sizes = [2, 128], strides = [1, 1]} : vector<4x384xf32> to vector<2x128xf32>
    %172 = vector.extract_strided_slice %154 {offsets = [0, 256], sizes = [2, 128], strides = [1, 1]} : vector<4x384xf32> to vector<2x128xf32>
    %173 = arith.addf %171, %172 : vector<2x128xf32>
    %174 = vector.broadcast %42 : vector<1x128xf32> to vector<2x128xf32>
    %175 = arith.addf %173, %174 : vector<2x128xf32>
    %176 = arith.mulf %175, %51 : vector<2x128xf32>
    %177 = math.tanh %176 : vector<2x128xf32>
    %178 = arith.mulf %177, %51 : vector<2x128xf32>
    %179 = arith.addf %178, %54 : vector<2x128xf32>
    %180 = vector.extract_strided_slice %179 {offsets = [0, 0], sizes = [2, 32], strides = [1, 1]} : vector<2x128xf32> to vector<2x32xf32>
    %181 = vector.extract_strided_slice %179 {offsets = [0, 32], sizes = [2, 32], strides = [1, 1]} : vector<2x128xf32> to vector<2x32xf32>
    %182 = vector.extract_strided_slice %179 {offsets = [0, 64], sizes = [2, 32], strides = [1, 1]} : vector<2x128xf32> to vector<2x32xf32>
    %183 = vector.extract_strided_slice %179 {offsets = [0, 96], sizes = [2, 32], strides = [1, 1]} : vector<2x128xf32> to vector<2x32xf32>
    %184 = arith.mulf %181, %150 : vector<2x32xf32>
    %185 = arith.mulf %180, %182 : vector<2x32xf32>
    %186 = arith.addf %184, %185 : vector<2x32xf32>
    %187 = math.tanh %186 : vector<2x32xf32>
    %188 = arith.mulf %183, %187 : vector<2x32xf32>
    %189 = tpu.concatenate %170, %188 in 0 : vector<2x32xf32>, vector<2x32xf32> -> vector<4x32xf32>
    %cst_47 = arith.constant dense<0.000000e+00> : vector<4x384xf32>
    %190 = tpu.matmul %189, %41, %cst_47 {dimension_numbers = #tpu.dot_dimension_numbers<[1], [0], [0], [1], [0, 0, 1, 1], [], []>} : vector<4x32xf32>, vector<32x384xf32>, vector<4x384xf32> -> vector<4x384xf32>
    %191 = vector.extract_strided_slice %190 {offsets = [2, 128], sizes = [2, 128], strides = [1, 1]} : vector<4x384xf32> to vector<2x128xf32>
    %192 = vector.extract_strided_slice %190 {offsets = [0, 256], sizes = [2, 128], strides = [1, 1]} : vector<4x384xf32> to vector<2x128xf32>
    %193 = arith.addf %191, %192 : vector<2x128xf32>
    %194 = vector.broadcast %42 : vector<1x128xf32> to vector<2x128xf32>
    %195 = arith.addf %193, %194 : vector<2x128xf32>
    %196 = arith.mulf %195, %51 : vector<2x128xf32>
    %197 = math.tanh %196 : vector<2x128xf32>
    %198 = arith.mulf %197, %51 : vector<2x128xf32>
    %199 = arith.addf %198, %54 : vector<2x128xf32>
    %200 = vector.extract_strided_slice %199 {offsets = [0, 0], sizes = [2, 32], strides = [1, 1]} : vector<2x128xf32> to vector<2x32xf32>
    %201 = vector.extract_strided_slice %199 {offsets = [0, 32], sizes = [2, 32], strides = [1, 1]} : vector<2x128xf32> to vector<2x32xf32>
    %202 = vector.extract_strided_slice %199 {offsets = [0, 64], sizes = [2, 32], strides = [1, 1]} : vector<2x128xf32> to vector<2x32xf32>
    %203 = vector.extract_strided_slice %199 {offsets = [0, 96], sizes = [2, 32], strides = [1, 1]} : vector<2x128xf32> to vector<2x32xf32>
    %204 = arith.mulf %201, %186 : vector<2x32xf32>
    %205 = arith.mulf %200, %202 : vector<2x32xf32>
    %206 = arith.addf %204, %205 : vector<2x32xf32>
    %207 = math.tanh %206 : vector<2x32xf32>
    %208 = arith.mulf %203, %207 : vector<2x32xf32>
    %c0_48 = arith.constant 0 : index
    %c0_49 = arith.constant 0 : index
    %c0_50 = arith.constant 0 : index
    %209 = vector.load %arg7[%c0_48, %c0_49, %c0_50] : memref<2x2x32xf32, #tpu.memory_space<vmem>>, vector<1x2x32xf32>
    %210 = vector.shape_cast %209 : vector<1x2x32xf32> to vector<2x32xf32>
    %211 = vector.shape_cast %170 : vector<2x32xf32> to vector<1x2x32xf32>
    tpu.vector_store %arg7[%c0_48, %c0_49, %c0_50], %211 {strides = array<i32>} : memref<2x2x32xf32, #tpu.memory_space<vmem>>, vector<1x2x32xf32>,
    %c0_51 = arith.constant 0 : index
    %c0_52 = arith.constant 0 : index
    %c0_53 = arith.constant 0 : index
    %212 = vector.load %arg8[%c0_51, %c0_52, %c0_53] : memref<2x2x32xf32, #tpu.memory_space<vmem>>, vector<1x2x32xf32>
    %213 = vector.shape_cast %212 : vector<1x2x32xf32> to vector<2x32xf32>
    %214 = vector.shape_cast %168 : vector<2x32xf32> to vector<1x2x32xf32>
    tpu.vector_store %arg8[%c0_51, %c0_52, %c0_53], %214 {strides = array<i32>} : memref<2x2x32xf32, #tpu.memory_space<vmem>>, vector<1x2x32xf32>,
    %c1_54 = arith.constant 1 : index
    %c0_55 = arith.constant 0 : index
    %c0_56 = arith.constant 0 : index
    %215 = vector.load %arg7[%c1_54, %c0_55, %c0_56] : memref<2x2x32xf32, #tpu.memory_space<vmem>>, vector<1x2x32xf32>
    %216 = vector.shape_cast %215 : vector<1x2x32xf32> to vector<2x32xf32>
    %217 = vector.shape_cast %208 : vector<2x32xf32> to vector<1x2x32xf32>
    tpu.vector_store %arg7[%c1_54, %c0_55, %c0_56], %217 {strides = array<i32>} : memref<2x2x32xf32, #tpu.memory_space<vmem>>, vector<1x2x32xf32>,
    %c1_57 = arith.constant 1 : index
    %c0_58 = arith.constant 0 : index
    %c0_59 = arith.constant 0 : index
    %218 = vector.load %arg8[%c1_57, %c0_58, %c0_59] : memref<2x2x32xf32, #tpu.memory_space<vmem>>, vector<1x2x32xf32>
    %219 = vector.shape_cast %218 : vector<1x2x32xf32> to vector<2x32xf32>
    %220 = vector.shape_cast %206 : vector<2x32xf32> to vector<1x2x32xf32>
    tpu.vector_store %arg8[%c1_57, %c0_58, %c0_59], %220 {strides = array<i32>} : memref<2x2x32xf32, #tpu.memory_space<vmem>>, vector<1x2x32xf32>,
    %221 = tpu.concatenate %116, %152, %188, %208 in 0 : vector<2x32xf32>, vector<2x32xf32>, vector<2x32xf32>, vector<2x32xf32> -> vector<8x32xf32>
    %c1840 = arith.constant 1840 : index
    %c0_60 = arith.constant 0 : index
    %222 = vector.load %arg4[%c1840, %c0_60] : memref<1880x256xf32, #tpu.memory_space<vmem>>, vector<32x6xf32>
    %cst_61 = arith.constant dense<0.000000e+00> : vector<8x6xf32>
    %223 = tpu.matmul %221, %222, %cst_61 {dimension_numbers = #tpu.dot_dimension_numbers<[1], [0], [0], [1], [0, 0, 1, 1], [], []>} : vector<8x32xf32>, vector<32x6xf32>, vector<8x6xf32> -> vector<8x6xf32>
    %c1872 = arith.constant 1872 : index
    %c0_62 = arith.constant 0 : index
    %224 = vector.load %arg4[%c1872, %c0_62] : memref<1880x256xf32, #tpu.memory_space<vmem>>, vector<1x6xf32>
    %225 = vector.broadcast %224 : vector<1x6xf32> to vector<8x6xf32>
    %226 = arith.addf %223, %225 : vector<8x6xf32>
    %227 = vector.extract_strided_slice %226 {offsets = [0, 0], sizes = [8, 1], strides = [1, 1]} : vector<8x6xf32> to vector<8x1xf32>
    %c0_63 = arith.constant 0 : index
    %c0_64 = arith.constant 0 : index
    %228 = vector.load %arg5[%c0_63, %c0_64] : memref<8x1xf32, #tpu.memory_space<vmem>>, vector<8x1xf32>
    tpu.vector_store %arg5[%c0_63, %c0_64], %227 {strides = array<i32>} : memref<8x1xf32, #tpu.memory_space<vmem>>, vector<8x1xf32>,
    %229 = vector.extract_strided_slice %226 {offsets = [0, 1], sizes = [8, 5], strides = [1, 1]} : vector<8x6xf32> to vector<8x5xf32>
    %cst_65 = arith.constant dense<0xFF800000> : vector<8xf32>
    %230 = vector.multi_reduction <maximumf>, %229, %cst_65 [1] : vector<8x5xf32> to vector<8xf32>
    %231 = vector.shape_cast %230 : vector<8xf32> to vector<8x1xf32>
    %232 = vector.broadcast %231 : vector<8x1xf32> to vector<8x5xf32>
    %233 = arith.subf %229, %232 : vector<8x5xf32>
    %234 = math.exp %233 : vector<8x5xf32>
    %cst_66 = arith.constant dense<0.000000e+00> : vector<8xf32>
    %235 = vector.multi_reduction <add>, %234, %cst_66 [1] : vector<8x5xf32> to vector<8xf32>
    %236 = vector.shape_cast %235 : vector<8xf32> to vector<8x1xf32>
    %237 = vector.broadcast %236 : vector<8x1xf32> to vector<8x5xf32>
    %238 = arith.divf %234, %237 : vector<8x5xf32>
    %c0_67 = arith.constant 0 : index
    %c0_68 = arith.constant 0 : index
    %239 = vector.load %arg6[%c0_67, %c0_68] : memref<8x5xf32, #tpu.memory_space<vmem>>, vector<8x5xf32>
    tpu.vector_store %arg6[%c0_67, %c0_68], %238 {strides = array<i32>} : memref<8x5xf32, #tpu.memory_space<vmem>>, vector<8x5xf32>,
    return
  }
}

</mosaic_0001>

<bundles_post_ra>
// kernel: ppo_lstm_forward.1
= control target key start
LH: loop header
LB: loop body
LE: loop exit
PB: predicated region body
PF: predicated region fallthrough
CT: control target
= control target key end

     0   :  { %14 = vsyncpa [#allocation3], 0  ;;  %s3155_s0 = inlined_call_operand.vmem [shape: f32[8,1296], index: 0, kind: input, shape index: {}]   ;;  %s3156_s1 = inlined_call_operand.vmem [shape: f32[8,2], index: 1, kind: input, shape index: {}]   ;;  %s3157_s2 = inlined_call_operand.hbm [shape: f32[2,2,32], index: 2, kind: input, shape index: {}]   ;;  %s3158_s3 = inlined_call_operand.hbm [shape: f32[2,2,32], index: 3, kind: input, shape index: {}]   ;;  %s3159_s4 = inlined_call_operand.hbm [shape: f32[1880,256], index: 4, kind: input, shape index: {}]   ;;  %s3160_s5 = inlined_call_operand.vmem [shape: f32[8,1], index: 5, kind: output, shape index: {0}]   ;;  %s3161_s6 = inlined_call_operand.hbm [shape: f32[8,5], index: 6, kind: output, shape index: {1}]   ;;  %s3162_s7 = inlined_call_operand.hbm [shape: f32[2,2,32], index: 7, kind: output, shape index: {2}]   ;;  %s3163_s8 = inlined_call_operand.hbm [shape: f32[2,2,32], index: 8, kind: output, shape index: {3}]  }
   0x1   :  { %15 = vsyncpa [#allocation6], 0 }
   0x2   :  { %16 = vsyncpa [#allocation4], 0 }
   0x3   :  { %17 = vsyncpa [#allocation10], 0  ;;  %s2749_s27 = smov [#allocation5]   ;;  %s2750_s29 = smov [#allocation2]  }
   0x4   :  { %s39_s28 = sshll.u32 %s2749_s27, 4  ;;  %s27_s30 = sshll.u32 %s2750_s29, 4  ;;  %s40_s28 = int_to_ptr.vmem [resolvable:$true] %s39_s28  ;;  %s28_s30 = int_to_ptr.vmem [resolvable:$true] %s27_s30 }
   0x5   :  { %s2629_s9 = scalar_lea.vmem %s40_s28, 64  ;;  %p2634_p1 = scmp.lt.s32.totalorder %s40_s28, %s40_s28 }
   0x6   :  { %p2630_p0 = scmp.ne.s32.totalorder %s40_s28, %s2629_s9  ;;  %p2635_p2 = scmp.lt.s32.totalorder %s2629_s9, %s2629_s9 }
   0x8   :  { %p2636_p3 = por %p2635_p2, %p2634_p1 }
   0xa   :  { %p2637_p4 = pnand %p2636_p3, %p2630_p0 }
   0xc   :  { %2640 = shalt.err (!%p2637_p4)
}
   0xd   :  { %s2751_s10 = smov 32   ;;  %s2752_s11 = smov 2  }
   0xe   :  { %45 = dma.hbm_to_vmem [thread:$0]  %s3158_s3, 64, %s40_s28, [#allocation6], %s2751_s10, %s2751_s10, %s2752_s11  }
   0xf   :  { %s2649_s14 = scalar_lea.vmem %s28_s30, 64  ;;  %p2654_p6 = scmp.lt.s32.totalorder %s28_s30, %s28_s30 }
  0x10   :  { %p2650_p5 = scmp.ne.s32.totalorder %s28_s30, %s2649_s14  ;;  %p2655_p7 = scmp.lt.s32.totalorder %s2649_s14, %s2649_s14 }
  0x12   :  { %p2656_p8 = por %p2655_p7, %p2654_p6 }
  0x14   :  { %p2657_p9 = pnand %p2656_p8, %p2650_p5 }
  0x16   :  { %2660 = shalt.err (!%p2657_p9)
}
  0x17   :  { %33 = dma.hbm_to_vmem [thread:$0]  %s3157_s2, 64, %s28_s30, [#allocation3], %s2751_s10, %s2751_s10, %s2752_s11  }
  0x18   :  { %s2753_s17 = smov [#allocation7]  }
  0x19   :  { %s51_s18 = sshll.u32 %s2753_s17, 4  ;;  %s52_s18 = int_to_ptr.vmem [resolvable:$true] %s51_s18 }
  0x1a   :  { %s2669_s19 = scalar_lea.vmem %s52_s18, 60160  ;;  %p2674_p11 = scmp.lt.s32.totalorder %s52_s18, %s52_s18 }
  0x1b   :  { %p2670_p10 = scmp.ne.s32.totalorder %s52_s18, %s2669_s19  ;;  %p2675_p12 = scmp.lt.s32.totalorder %s2669_s19, %s2669_s19 }
  0x1d   :  { %p2676_p13 = por %p2675_p12, %p2674_p11 }
  0x1f   :  { %p2677_p0 = pnand %p2676_p13, %p2670_p10 }
  0x21   :  { %2680 = shalt.err (!%p2677_p0)
}
  0x22   :  { %s2754_s3 = smov 256   ;;  %s2755_s20 = smov 16  }
  0x23   :  { %57 = dma.hbm_to_vmem [thread:$0]  %s3159_s4, 60160, %s52_s18, [#allocation6], %s2754_s3, %s2754_s3, %s2755_s20  }
  0x24   :  { %2741 = dma.done.wait [#allocation3], 64  }
  0x25   :  { %2742 = vsyncadd [#allocation3], 4294967232 }
  0x26   :  { %2743 = dma.done.wait [#allocation6], 60224  }
  0x27   :  { %2744 = vsyncadd [#allocation6], 4294907072  ;;  %v109_v0 = vld [vmem:[#allocation7 + $0xf8] sm:$0xff]  ;;  %v108_v1 = vld [vmem:[#allocation7 + $0xf0] sm:$0xff]  ;;  %vm415_vm0 = vcmask 130048   ;;  %vm2757_vm1 = vmmov 0  }
  0x28   :  { %v107_v2 = vld [vmem:[#allocation7 + $0xe8] sm:$0xff]  ;;  %419 = vmatprep.subr.mxu0 %v109_v0  ;;  %v173_v3 = vld [vmem:[#allocation7 + $0x2f8] sm:$0xff]  ;;  %v106_v4 = vld [vmem:[#allocation7 + $0xe0] sm:$0xff]  ;;  %vm961_vm2 = vcmask 588800   ;;  %vm1043_vm3 = vcmask 1041408   ;;  %vm1039_vm4 = vcmask 15360  }
  0x29   :  { %v172_v5 = vld [vmem:[#allocation7 + $0x2f0] sm:$0xff]  ;;  %420 = vmatpush1.msra.mxu0 %v108_v1  ;;  %490 = vmatprep.subr.mxu1 %v173_v3  ;;  %v105_v6 = vld [vmem:[#allocation7 + $0xd8] sm:$0xff]  ;;  %v171_v7 = vld [vmem:[#allocation7 + $0x2e8] sm:$0xff]  ;;  %vm1126_vm5 = vcmask 261120   ;;  %s2760_s2 = smov 96   ;;  %vm2209_vm9 = vcmask 1043456  }
  0x2a   :  { %421 = vmatprep.subr.mxu0 %v107_v2  ;;  %491 = vmatpush1.msra.mxu1 %v172_v5  ;;  %v104_v8 = vld [vmem:[#allocation7 + $0xd0] sm:$0xff]  ;;  %v170_v9 = vld [vmem:[#allocation7 + $0x2e0] sm:$0xff]  ;;  %v169_v10 = vld [vmem:[#allocation7 + $0x2d8] sm:$0xff]  ;;  %vm2211_vm10 = vcmask 1045504   ;;  %vm2293_vm11 = vcmask 7168   ;;  %vm2295_vm12 = vcmask 48136  }
  0x2b   :  { %422 = vmatpush1.msra.mxu0 %v106_v4  ;;  %492 = vmatprep.subr.mxu1 %v171_v7  ;;  %v103_v11 = vld [vmem:[#allocation7 + $0xc8] sm:$0xff]  ;;  %v168_v12 = vld [vmem:[#allocation7 + $0x2d0] sm:$0xff]  ;;  %v102_v13 = vld [vmem:[#allocation7 + $0xc0] sm:$0xff]  ;;  %vm2180_vm13 = vcmask 254976   ;;  %vm2192_vm14 = vcmask 257026   ;;  %vm2306_vm15 = vcmask 39936  }
  0x2c   :  { %423 = vmatprep.subr.mxu0 %v105_v6  ;;  %493 = vmatpush1.msra.mxu1 %v170_v9  ;;  %v167_v14 = vld [vmem:[#allocation7 + $0x2c8] sm:$0xff]  ;;  %v101_v15 = vld [vmem:[#allocation7 + $0xb8] sm:$0xff]  ;;  %v166_v16 = vld [vmem:[#allocation7 + $0x2c0] sm:$0xff]  ;;  %s2762_s24 = smov [#allocation9]   ;;  %s2763_s26 = smov [#allocation11]  }
  0x2d   :  { %424 = vmatpush1.msra.mxu0 %v104_v8  ;;  %494 = vmatprep.subr.mxu1 %v169_v10  ;;  %v100_v17 = vld [vmem:[#allocation7 + $0xb0] sm:$0xff]  ;;  %v165_v18 = vld [vmem:[#allocation7 + $0x2b8] sm:$0xff]  ;;  %v99_v19 = vld [vmem:[#allocation7 + $0xa8] sm:$0xff]  ;;  %s2334_s25 = sshll.u32 %s2762_s24, 4  ;;  %s2346_s27 = sshll.u32 %s2763_s26, 4  ;;  %s2335_s25 = int_to_ptr.vmem [resolvable:$true] %s2334_s25  ;;  %s2347_s27 = int_to_ptr.vmem [resolvable:$true] %s2346_s27 }
  0x2e   :  { %425 = vmatprep.subr.mxu0 %v103_v11  ;;  %495 = vmatpush1.msra.mxu1 %v168_v12  ;;  %v164_v20 = vld [vmem:[#allocation7 + $0x2b0] sm:$0xff]  ;;  %v98_v21 = vld [vmem:[#allocation7 + $0xa0] sm:$0xff]  ;;  %v163_v22 = vld [vmem:[#allocation7 + $0x2a8] sm:$0xff]  ;;  %s2681_s28 = scalar_lea.vmem %s2335_s25, 64  ;;  %p2686_p2 = scmp.lt.s32.totalorder %s2335_s25, %s2335_s25 }
  0x2f   :  { %426 = vmatpush1.msra.mxu0 %v102_v13  ;;  %496 = vmatprep.subr.mxu1 %v167_v14  ;;  %v97_v23 = vld [vmem:[#allocation7 + $0x98] sm:$0xff]  ;;  %v162_v24 = vld [vmem:[#allocation7 + $0x2a0] sm:$0xff]  ;;  %v96_v25 = vld [vmem:[#allocation7 + $0x90] sm:$0xff]  ;;  %p2682_p1 = scmp.ne.s32.totalorder %s2335_s25, %s2681_s28  ;;  %p2687_p3 = scmp.lt.s32.totalorder %s2681_s28, %s2681_s28 }
  0x30   :  { %427 = vmatprep.subr.mxu0 %v101_v15  ;;  %497 = vmatpush1.msra.mxu1 %v166_v16  ;;  %v161_v26 = vld [vmem:[#allocation7 + $0x298] sm:$0xff]  ;;  %v95_v27 = vld [vmem:[#allocation7 + $0x88] sm:$0xff]  ;;  %v160_v28 = vld [vmem:[#allocation7 + $0x290] sm:$0xff] }
  0x31   :  { %428 = vmatpush1.msra.mxu0 %v100_v17  ;;  %498 = vmatprep.subr.mxu1 %v165_v18  ;;  %v94_v29 = vld [vmem:[#allocation7 + $0x80] sm:$0xff]  ;;  %v159_v30 = vld [vmem:[#allocation7 + $0x288] sm:$0xff]  ;;  %v93_v31 = vld [vmem:[#allocation7 + $0x78] sm:$0xff]  ;;  %p2688_p4 = por %p2687_p3, %p2686_p2 }
  0x32   :  { %429 = vmatprep.subr.mxu0 %v99_v19  ;;  %499 = vmatpush1.msra.mxu1 %v164_v20  ;;  %v158_v32 = vld [vmem:[#allocation7 + $0x280] sm:$0xff]  ;;  %v92_v33 = vld [vmem:[#allocation7 + $0x70] sm:$0xff]  ;;  %v157_v34 = vld [vmem:[#allocation7 + $0x278] sm:$0xff] }
  0x33   :  { %430 = vmatpush1.msra.mxu0 %v98_v21  ;;  %500 = vmatprep.subr.mxu1 %v163_v22  ;;  %v91_v35 = vld [vmem:[#allocation7 + $0x68] sm:$0xff]  ;;  %v156_v36 = vld [vmem:[#allocation7 + $0x270] sm:$0xff]  ;;  %v90_v37 = vld [vmem:[#allocation7 + $0x60] sm:$0xff]  ;;  %p2689_p5 = pnand %p2688_p4, %p2682_p1 }
  0x34   :  { %431 = vmatprep.subr.mxu0 %v97_v23  ;;  %501 = vmatpush1.msra.mxu1 %v162_v24  ;;  %v155_v38 = vld [vmem:[#allocation7 + $0x268] sm:$0xff]  ;;  %v89_v39 = vld [vmem:[#allocation7 + $0x58] sm:$0xff]  ;;  %v154_v40 = vld [vmem:[#allocation7 + $0x260] sm:$0xff] }
  0x35   :  { %432 = vmatpush1.msra.mxu0 %v96_v25  ;;  %502 = vmatprep.subr.mxu1 %v161_v26  ;;  %v88_v41 = vld [vmem:[#allocation7 + $0x50] sm:$0xff]  ;;  %v153_v42 = vld [vmem:[#allocation7 + $0x258] sm:$0xff]  ;;  %v87_v43 = vld [vmem:[#allocation7 + $0x48] sm:$0xff] }
  0x36   :  { %433 = vmatprep.subr.mxu0 %v95_v27  ;;  %503 = vmatpush1.msra.mxu1 %v160_v28  ;;  %v152_v44 = vld [vmem:[#allocation7 + $0x250] sm:$0xff]  ;;  %v86_v45 = vld [vmem:[#allocation7 + $0x40] sm:$0xff]  ;;  %v151_v46 = vld [vmem:[#allocation7 + $0x248] sm:$0xff] }
  0x37   :  { %434 = vmatpush1.msra.mxu0 %v94_v29  ;;  %504 = vmatprep.subr.mxu1 %v159_v30  ;;  %v85_v47 = vld [vmem:[#allocation7 + $0x38] sm:$0xff]  ;;  %v150_v48 = vld [vmem:[#allocation7 + $0x240] sm:$0xff]  ;;  %v84_v49 = vld [vmem:[#allocation7 + $0x30] sm:$0xff] }
  0x38   :  { %435 = vmatprep.subr.mxu0 %v93_v31  ;;  %505 = vmatpush1.msra.mxu1 %v158_v32  ;;  %v149_v50 = vld [vmem:[#allocation7 + $0x238] sm:$0xff]  ;;  %v83_v51 = vld [vmem:[#allocation7 + $0x28] sm:$0xff]  ;;  %v148_v52 = vld [vmem:[#allocation7 + $0x230] sm:$0xff] }
  0x39   :  { %436 = vmatpush1.msra.mxu0 %v92_v33  ;;  %506 = vmatprep.subr.mxu1 %v157_v34  ;;  %v82_v53 = vld [vmem:[#allocation7 + $0x20] sm:$0xff]  ;;  %v147_v54 = vld [vmem:[#allocation7 + $0x228] sm:$0xff]  ;;  %v81_v55 = vld [vmem:[#allocation7 + $0x18] sm:$0xff] }
  0x3a   :  { %437 = vmatprep.subr.mxu0 %v91_v35  ;;  %507 = vmatpush1.msra.mxu1 %v156_v36  ;;  %v146_v56 = vld [vmem:[#allocation7 + $0x220] sm:$0xff]  ;;  %v80_v57 = vld [vmem:[#allocation7 + $0x10] sm:$0xff]  ;;  %v145_v58 = vld [vmem:[#allocation7 + $0x218] sm:$0xff] }
  0x3b   :  { %438 = vmatpush1.msra.mxu0 %v90_v37  ;;  %508 = vmatprep.subr.mxu1 %v155_v38  ;;  %v79_v59 = vld [vmem:[#allocation7 + $0x8] sm:$0xff]  ;;  %v144_v60 = vld [vmem:[#allocation7 + $0x210] sm:$0xff]  ;;  %v78_v61 = vld [vmem:[#allocation7] sm:$0xff] }
  0x3c   :  { %439 = vmatprep.subr.mxu0 %v89_v39  ;;  %509 = vmatpush1.msra.mxu1 %v154_v40  ;;  %v143_v62 = vld [vmem:[#allocation7 + $0x208] sm:$0xff]  ;;  %v141_v63 = vld [vmem:[#allocation7 + $0x1f8] sm:$0xff]  ;;  %v142_v0 = vld [vmem:[#allocation7 + $0x200] sm:$0xff] }
  0x3d   :  { %440 = vmatpush1.msra.mxu0 %v88_v41  ;;  %510 = vmatprep.subr.mxu1 %v153_v42  ;;  %v140_v1 = vld [vmem:[#allocation7 + $0x1f0] sm:$0xff]  ;;  %v205_v2 = vld [vmem:[#allocation7 + $0x3f8] sm:$0xff]  ;;  %v139_v3 = vld [vmem:[#allocation7 + $0x1e8] sm:$0xff] }
  0x3e   :  { %441 = vmatprep.subr.mxu0 %v87_v43  ;;  %511 = vmatpush1.msra.mxu1 %v152_v44  ;;  %v204_v4 = vld [vmem:[#allocation7 + $0x3f0] sm:$0xff]  ;;  %v138_v5 = vld [vmem:[#allocation7 + $0x1e0] sm:$0xff]  ;;  %v203_v6 = vld [vmem:[#allocation7 + $0x3e8] sm:$0xff] }
  0x3f   :  { %442 = vmatpush1.msra.mxu0 %v86_v45  ;;  %512 = vmatprep.subr.mxu1 %v151_v46  ;;  %v137_v7 = vld [vmem:[#allocation7 + $0x1d8] sm:$0xff]  ;;  %v202_v8 = vld [vmem:[#allocation7 + $0x3e0] sm:$0xff]  ;;  %v136_v9 = vld [vmem:[#allocation7 + $0x1d0] sm:$0xff] }
  0x40   :  { %443 = vmatprep.subr.mxu0 %v85_v47  ;;  %513 = vmatpush1.msra.mxu1 %v150_v48  ;;  %v201_v10 = vld [vmem:[#allocation7 + $0x3d8] sm:$0xff]  ;;  %v135_v11 = vld [vmem:[#allocation7 + $0x1c8] sm:$0xff]  ;;  %v200_v12 = vld [vmem:[#allocation7 + $0x3d0] sm:$0xff] }
  0x41   :  { %444 = vmatpush1.msra.mxu0 %v84_v49  ;;  %514 = vmatprep.subr.mxu1 %v149_v50  ;;  %v134_v13 = vld [vmem:[#allocation7 + $0x1c0] sm:$0xff]  ;;  %v199_v14 = vld [vmem:[#allocation7 + $0x3c8] sm:$0xff]  ;;  %v133_v15 = vld [vmem:[#allocation7 + $0x1b8] sm:$0xff] }
  0x42   :  { %445 = vmatprep.subr.mxu0 %v83_v51  ;;  %515 = vmatpush1.msra.mxu1 %v148_v52  ;;  %v198_v16 = vld [vmem:[#allocation7 + $0x3c0] sm:$0xff]  ;;  %v132_v17 = vld [vmem:[#allocation7 + $0x1b0] sm:$0xff]  ;;  %v197_v18 = vld [vmem:[#allocation7 + $0x3b8] sm:$0xff] }
  0x43   :  { %446 = vmatpush1.msra.mxu0 %v82_v53  ;;  %516 = vmatprep.subr.mxu1 %v147_v54  ;;  %v131_v19 = vld [vmem:[#allocation7 + $0x1a8] sm:$0xff]  ;;  %v196_v20 = vld [vmem:[#allocation7 + $0x3b0] sm:$0xff]  ;;  %v130_v21 = vld [vmem:[#allocation7 + $0x1a0] sm:$0xff] }
  0x44   :  { %447 = vmatprep.subr.mxu0 %v81_v55  ;;  %517 = vmatpush1.msra.mxu1 %v146_v56  ;;  %v195_v22 = vld [vmem:[#allocation7 + $0x3a8] sm:$0xff]  ;;  %v129_v23 = vld [vmem:[#allocation7 + $0x198] sm:$0xff]  ;;  %v194_v24 = vld [vmem:[#allocation7 + $0x3a0] sm:$0xff] }
  0x45   :  { %448 = vmatpush1.msra.mxu0 %v80_v57  ;;  %518 = vmatprep.subr.mxu1 %v145_v58  ;;  %v128_v25 = vld [vmem:[#allocation7 + $0x190] sm:$0xff]  ;;  %v193_v26 = vld [vmem:[#allocation7 + $0x398] sm:$0xff]  ;;  %v127_v27 = vld [vmem:[#allocation7 + $0x188] sm:$0xff] }
  0x46   :  { %449 = vmatprep.subr.mxu0 %v79_v59  ;;  %519 = vmatpush1.msra.mxu1 %v144_v60  ;;  %v192_v28 = vld [vmem:[#allocation7 + $0x390] sm:$0xff]  ;;  %v126_v29 = vld [vmem:[#allocation7 + $0x180] sm:$0xff]  ;;  %v191_v30 = vld [vmem:[#allocation7 + $0x388] sm:$0xff] }
  0x47   :  { %450 = vmatpush1.msra.mxu0 %v78_v61  ;;  %520 = vmatprep.subr.mxu1 %v143_v62  ;;  %v125_v31 = vld [vmem:[#allocation7 + $0x178] sm:$0xff]  ;;  %v190_v32 = vld [vmem:[#allocation7 + $0x380] sm:$0xff]  ;;  %v124_v33 = vld [vmem:[#allocation7 + $0x170] sm:$0xff] }
  0x48   :  { %451 = vmatprep.subr.mxu0 %v141_v63  ;;  %521 = vmatpush1.msra.mxu1 %v142_v0  ;;  %v189_v34 = vld [vmem:[#allocation7 + $0x378] sm:$0xff]  ;;  %v123_v35 = vld [vmem:[#allocation7 + $0x168] sm:$0xff]  ;;  %v188_v36 = vld [vmem:[#allocation7 + $0x370] sm:$0xff] }
  0x49   :  { %452 = vmatpush2.msra.mxu0 %v140_v1  ;;  %522 = vmatprep.subr.mxu1 %v205_v2  ;;  %v122_v37 = vld [vmem:[#allocation7 + $0x160] sm:$0xff]  ;;  %v187_v38 = vld [vmem:[#allocation7 + $0x368] sm:$0xff]  ;;  %v121_v39 = vld [vmem:[#allocation7 + $0x158] sm:$0xff] }
  0x4a   :  { %453 = vmatprep.subr.mxu0 %v139_v3  ;;  %523 = vmatpush2.msra.mxu1 %v204_v4  ;;  %v186_v40 = vld [vmem:[#allocation7 + $0x360] sm:$0xff]  ;;  %v120_v41 = vld [vmem:[#allocation7 + $0x150] sm:$0xff]  ;;  %v185_v42 = vld [vmem:[#allocation7 + $0x358] sm:$0xff] }
  0x4b   :  { %454 = vmatpush2.msra.mxu0 %v138_v5  ;;  %524 = vmatprep.subr.mxu1 %v203_v6  ;;  %v119_v43 = vld [vmem:[#allocation7 + $0x148] sm:$0xff]  ;;  %v184_v44 = vld [vmem:[#allocation7 + $0x350] sm:$0xff]  ;;  %v118_v45 = vld [vmem:[#allocation7 + $0x140] sm:$0xff] }
  0x4c   :  { %455 = vmatprep.subr.mxu0 %v137_v7  ;;  %525 = vmatpush2.msra.mxu1 %v202_v8  ;;  %v183_v46 = vld [vmem:[#allocation7 + $0x348] sm:$0xff]  ;;  %v117_v47 = vld [vmem:[#allocation7 + $0x138] sm:$0xff]  ;;  %v182_v48 = vld [vmem:[#allocation7 + $0x340] sm:$0xff] }
  0x4d   :  { %456 = vmatpush2.msra.mxu0 %v136_v9  ;;  %526 = vmatprep.subr.mxu1 %v201_v10  ;;  %v116_v49 = vld [vmem:[#allocation7 + $0x130] sm:$0xff]  ;;  %v181_v50 = vld [vmem:[#allocation7 + $0x338] sm:$0xff]  ;;  %v115_v51 = vld [vmem:[#allocation7 + $0x128] sm:$0xff] }
  0x4e   :  { %457 = vmatprep.subr.mxu0 %v135_v11  ;;  %527 = vmatpush2.msra.mxu1 %v200_v12  ;;  %v180_v52 = vld [vmem:[#allocation7 + $0x330] sm:$0xff]  ;;  %v114_v53 = vld [vmem:[#allocation7 + $0x120] sm:$0xff]  ;;  %v179_v54 = vld [vmem:[#allocation7 + $0x328] sm:$0xff] }
  0x4f   :  { %458 = vmatpush2.msra.mxu0 %v134_v13  ;;  %528 = vmatprep.subr.mxu1 %v199_v14  ;;  %v113_v55 = vld [vmem:[#allocation7 + $0x118] sm:$0xff]  ;;  %v178_v56 = vld [vmem:[#allocation7 + $0x320] sm:$0xff]  ;;  %v112_v57 = vld [vmem:[#allocation7 + $0x110] sm:$0xff] }
  0x50   :  { %459 = vmatprep.subr.mxu0 %v133_v15  ;;  %529 = vmatpush2.msra.mxu1 %v198_v16  ;;  %v177_v58 = vld [vmem:[#allocation7 + $0x318] sm:$0xff]  ;;  %v111_v59 = vld [vmem:[#allocation7 + $0x108] sm:$0xff]  ;;  %v68_v60 = vld [vmem:[%s3155_s0 + $0x8] sm:$0xff] }
  0x51   :  { %460 = vmatpush2.msra.mxu0 %v132_v17  ;;  %530 = vmatprep.subr.mxu1 %v197_v18  ;;  %v110_v61 = vld [vmem:[#allocation7 + $0x100] sm:$0xff]  ;;  %v176_v62 = vld [vmem:[#allocation7 + $0x310] sm:$0xff]  ;;  %v67_v63 = vld [vmem:[%s3155_s0] sm:$0xff] }
  0x52   :  { %461 = vmatprep.subr.mxu0 %v131_v19  ;;  %531 = vmatpush2.msra.mxu1 %v196_v20  ;;  %v175_v0 = vld [vmem:[#allocation7 + $0x308] sm:$0xff]  ;;  %v237_v1 = vld [vmem:[#allocation7 + $0x4f8] sm:$0xff]  ;;  %v174_v2 = vld [vmem:[#allocation7 + $0x300] sm:$0xff] }
  0x53   :  { %462 = vmatpush2.msra.mxu0 %v130_v21  ;;  %532 = vmatprep.subr.mxu1 %v195_v22  ;;  %v70_v3 = vld [vmem:[%s3155_s0 + $0x18] sm:$0xff]  ;;  %v69_v5 = vld [vmem:[%s3155_s0 + $0x10] sm:$0xff]  ;;  %v301_v7 = vld [vmem:[#allocation7 + $0x6f8] sm:$0xff] }
  0x54   :  { %463 = vmatprep.subr.mxu0 %v129_v23  ;;  %533 = vmatpush2.msra.mxu1 %v194_v24  ;;  %v236_v4 = vld [vmem:[#allocation7 + $0x4f0] sm:$0xff]  ;;  %v235_v6 = vld [vmem:[#allocation7 + $0x4e8] sm:$0xff]  ;;  %v234_v8 = vld [vmem:[#allocation7 + $0x4e0] sm:$0xff] }
  0x55   :  { %464 = vmatpush2.msra.mxu0 %v128_v25  ;;  %534 = vmatprep.subr.mxu1 %v193_v26  ;;  %v300_v9 = vld [vmem:[#allocation7 + $0x6f0] sm:$0xff]  ;;  %v233_v10 = vld [vmem:[#allocation7 + $0x4d8] sm:$0xff]  ;;  %v299_v11 = vld [vmem:[#allocation7 + $0x6e8] sm:$0xff] }
  0x56   :  { %465 = vmatprep.subr.mxu0 %v127_v27  ;;  %535 = vmatpush2.msra.mxu1 %v192_v28  ;;  %v232_v12 = vld [vmem:[#allocation7 + $0x4d0] sm:$0xff]  ;;  %v298_v13 = vld [vmem:[#allocation7 + $0x6e0] sm:$0xff]  ;;  %v231_v14 = vld [vmem:[#allocation7 + $0x4c8] sm:$0xff] }
  0x57   :  { %466 = vmatpush2.msra.mxu0 %v126_v29  ;;  %536 = vmatprep.subr.mxu1 %v191_v30  ;;  %v297_v15 = vld [vmem:[#allocation7 + $0x6d8] sm:$0xff]  ;;  %v230_v16 = vld [vmem:[#allocation7 + $0x4c0] sm:$0xff]  ;;  %v296_v17 = vld [vmem:[#allocation7 + $0x6d0] sm:$0xff] }
  0x58   :  { %467 = vmatprep.subr.mxu0 %v125_v31  ;;  %537 = vmatpush2.msra.mxu1 %v190_v32  ;;  %v229_v18 = vld [vmem:[#allocation7 + $0x4b8] sm:$0xff]  ;;  %v295_v19 = vld [vmem:[#allocation7 + $0x6c8] sm:$0xff]  ;;  %v228_v20 = vld [vmem:[#allocation7 + $0x4b0] sm:$0xff] }
  0x59   :  { %468 = vmatpush2.msra.mxu0 %v124_v33  ;;  %538 = vmatprep.subr.mxu1 %v189_v34  ;;  %v294_v21 = vld [vmem:[#allocation7 + $0x6c0] sm:$0xff]  ;;  %v227_v22 = vld [vmem:[#allocation7 + $0x4a8] sm:$0xff]  ;;  %v293_v23 = vld [vmem:[#allocation7 + $0x6b8] sm:$0xff] }
  0x5a   :  { %469 = vmatprep.subr.mxu0 %v123_v35  ;;  %539 = vmatpush2.msra.mxu1 %v188_v36  ;;  %v226_v24 = vld [vmem:[#allocation7 + $0x4a0] sm:$0xff]  ;;  %v292_v25 = vld [vmem:[#allocation7 + $0x6b0] sm:$0xff]  ;;  %v225_v26 = vld [vmem:[#allocation7 + $0x498] sm:$0xff] }
  0x5b   :  { %470 = vmatpush2.msra.mxu0 %v122_v37  ;;  %540 = vmatprep.subr.mxu1 %v187_v38  ;;  %v291_v27 = vld [vmem:[#allocation7 + $0x6a8] sm:$0xff]  ;;  %v224_v28 = vld [vmem:[#allocation7 + $0x490] sm:$0xff]  ;;  %v290_v29 = vld [vmem:[#allocation7 + $0x6a0] sm:$0xff] }
  0x5c   :  { %471 = vmatprep.subr.mxu0 %v121_v39  ;;  %541 = vmatpush2.msra.mxu1 %v186_v40  ;;  %v223_v30 = vld [vmem:[#allocation7 + $0x488] sm:$0xff]  ;;  %v289_v31 = vld [vmem:[#allocation7 + $0x698] sm:$0xff]  ;;  %v222_v32 = vld [vmem:[#allocation7 + $0x480] sm:$0xff] }
  0x5d   :  { %472 = vmatpush2.msra.mxu0 %v120_v41  ;;  %542 = vmatprep.subr.mxu1 %v185_v42  ;;  %v288_v33 = vld [vmem:[#allocation7 + $0x690] sm:$0xff]  ;;  %v221_v34 = vld [vmem:[#allocation7 + $0x478] sm:$0xff]  ;;  %v287_v35 = vld [vmem:[#allocation7 + $0x688] sm:$0xff] }
  0x5e   :  { %473 = vmatprep.subr.mxu0 %v119_v43  ;;  %543 = vmatpush2.msra.mxu1 %v184_v44  ;;  %v220_v36 = vld [vmem:[#allocation7 + $0x470] sm:$0xff]  ;;  %v286_v37 = vld [vmem:[#allocation7 + $0x680] sm:$0xff]  ;;  %v219_v38 = vld [vmem:[#allocation7 + $0x468] sm:$0xff] }
  0x5f   :  { %474 = vmatpush2.msra.mxu0 %v118_v45  ;;  %544 = vmatprep.subr.mxu1 %v183_v46  ;;  %v285_v39 = vld [vmem:[#allocation7 + $0x678] sm:$0xff]  ;;  %v218_v40 = vld [vmem:[#allocation7 + $0x460] sm:$0xff]  ;;  %v284_v41 = vld [vmem:[#allocation7 + $0x670] sm:$0xff] }
  0x60   :  { %475 = vmatprep.subr.mxu0 %v117_v47  ;;  %545 = vmatpush2.msra.mxu1 %v182_v48  ;;  %v217_v42 = vld [vmem:[#allocation7 + $0x458] sm:$0xff]  ;;  %v283_v43 = vld [vmem:[#allocation7 + $0x668] sm:$0xff]  ;;  %v216_v44 = vld [vmem:[#allocation7 + $0x450] sm:$0xff] }
  0x61   :  { %476 = vmatpush2.msra.mxu0 %v116_v49  ;;  %546 = vmatprep.subr.mxu1 %v181_v50  ;;  %v282_v45 = vld [vmem:[#allocation7 + $0x660] sm:$0xff]  ;;  %v215_v46 = vld [vmem:[#allocation7 + $0x448] sm:$0xff]  ;;  %v281_v47 = vld [vmem:[#allocation7 + $0x658] sm:$0xff] }
  0x62   :  { %477 = vmatprep.subr.mxu0 %v115_v51  ;;  %547 = vmatpush2.msra.mxu1 %v180_v52  ;;  %v214_v48 = vld [vmem:[#allocation7 + $0x440] sm:$0xff]  ;;  %v280_v49 = vld [vmem:[#allocation7 + $0x650] sm:$0xff]  ;;  %v213_v50 = vld [vmem:[#allocation7 + $0x438] sm:$0xff] }
  0x63   :  { %478 = vmatpush2.msra.mxu0 %v114_v53  ;;  %548 = vmatprep.subr.mxu1 %v179_v54  ;;  %v279_v51 = vld [vmem:[#allocation7 + $0x648] sm:$0xff]  ;;  %v212_v52 = vld [vmem:[#allocation7 + $0x430] sm:$0xff]  ;;  %v278_v53 = vld [vmem:[#allocation7 + $0x640] sm:$0xff] }
  0x64   :  { %479 = vmatprep.subr.mxu0 %v113_v55  ;;  %549 = vmatpush2.msra.mxu1 %v178_v56  ;;  %v211_v54 = vld [vmem:[#allocation7 + $0x428] sm:$0xff]  ;;  %v277_v55 = vld [vmem:[#allocation7 + $0x638] sm:$0xff]  ;;  %v210_v56 = vld [vmem:[#allocation7 + $0x420] sm:$0xff] }
  0x65   :  { %480 = vmatpush2.msra.mxu0 %v112_v57  ;;  %550 = vmatprep.subr.mxu1 %v177_v58  ;;  %v276_v57 = vld [vmem:[#allocation7 + $0x630] sm:$0xff]  ;;  %v209_v58 = vld [vmem:[#allocation7 + $0x418] sm:$0xff] }
  0x66   :  { %481 = vmatprep.subr.mxu0 %v111_v59  ;;  %483 = vmatprep.mubr.f32.mxu0 %v68_v60  ;;  %v275_v59 = vld [vmem:[#allocation7 + $0x628] sm:$0xff]  ;;  %v208_v60 = vld [vmem:[#allocation7 + $0x410] sm:$0xff] }
  0x67   :  { %482 = vmatpush2.msra.mxu0 %v110_v61  ;;  %551 = vmatpush2.msra.mxu1 %v176_v62  ;;  %v274_v61 = vld [vmem:[#allocation7 + $0x620] sm:$0xff]  ;;  %v207_v62 = vld [vmem:[#allocation7 + $0x408] sm:$0xff] }
  0x68   :  { %484 = vmatmul.mubr.f32.vlgmr.msra.gmra.mxu0 %v67_v63  ;;  %552 = vmatprep.subr.mxu1 %v175_v0  ;;  %v273_v63 = vld [vmem:[#allocation7 + $0x618] sm:$0xff]  ;;  %v206_v0 = vld [vmem:[#allocation7 + $0x400] sm:$0xff] }
  0x69   :  { %561 = vmatprep.subr.mxu0 %v237_v1  ;;  %553 = vmatpush2.msra.mxu1 %v174_v2  ;;  %v272_v1 = vld [vmem:[#allocation7 + $0x610] sm:$0xff]  ;;  %v269_v2 = vld [vmem:[#allocation7 + $0x5f8] sm:$0xff] }
  0x6a   :  { %554 = vmatprep.mubr.f32.mxu1 %v70_v3  ;;  %562 = vmatpush1.msra.mxu0 %v236_v4  ;;  %v271_v3 = vld [vmem:[#allocation7 + $0x608] sm:$0xff]  ;;  %v268_v4 = vld [vmem:[#allocation7 + $0x5f0] sm:$0xff] }
  0x6b   :  { %555 = vmatmul.mubr.f32.vlgmr.msra.gmra.mxu1 %v69_v5  ;;  %563 = vmatprep.subr.mxu0 %v235_v6  ;;  %v270_v5 = vld [vmem:[#allocation7 + $0x600] sm:$0xff]  ;;  %v267_v6 = vld [vmem:[#allocation7 + $0x5e8] sm:$0xff] }
  0x6c   :  { %632 = vmatprep.subr.mxu1 %v301_v7  ;;  %564 = vmatpush1.msra.mxu0 %v234_v8  ;;  %v333_v7 = vld [vmem:[#allocation7 + $0x7f8] sm:$0xff]  ;;  %v266_v8 = vld [vmem:[#allocation7 + $0x5e0] sm:$0xff] }
  0x6d   :  { %633 = vmatpush1.msra.mxu1 %v300_v9  ;;  %565 = vmatprep.subr.mxu0 %v233_v10  ;;  %v332_v9 = vld [vmem:[#allocation7 + $0x7f0] sm:$0xff]  ;;  %v265_v10 = vld [vmem:[#allocation7 + $0x5d8] sm:$0xff] }
  0x6e   :  { %634 = vmatprep.subr.mxu1 %v299_v11  ;;  %566 = vmatpush1.msra.mxu0 %v232_v12  ;;  %v331_v11 = vld [vmem:[#allocation7 + $0x7e8] sm:$0xff]  ;;  %v264_v12 = vld [vmem:[#allocation7 + $0x5d0] sm:$0xff] }
  0x6f   :  { %635 = vmatpush1.msra.mxu1 %v298_v13  ;;  %567 = vmatprep.subr.mxu0 %v231_v14  ;;  %v330_v13 = vld [vmem:[#allocation7 + $0x7e0] sm:$0xff]  ;;  %v263_v14 = vld [vmem:[#allocation7 + $0x5c8] sm:$0xff] }
  0x70   :  { %636 = vmatprep.subr.mxu1 %v297_v15  ;;  %568 = vmatpush1.msra.mxu0 %v230_v16  ;;  %v329_v15 = vld [vmem:[#allocation7 + $0x7d8] sm:$0xff]  ;;  %v262_v16 = vld [vmem:[#allocation7 + $0x5c0] sm:$0xff] }
  0x71   :  { %637 = vmatpush1.msra.mxu1 %v296_v17  ;;  %569 = vmatprep.subr.mxu0 %v229_v18  ;;  %v328_v17 = vld [vmem:[#allocation7 + $0x7d0] sm:$0xff]  ;;  %v261_v18 = vld [vmem:[#allocation7 + $0x5b8] sm:$0xff] }
  0x72   :  { %638 = vmatprep.subr.mxu1 %v295_v19  ;;  %570 = vmatpush1.msra.mxu0 %v228_v20  ;;  %v327_v19 = vld [vmem:[#allocation7 + $0x7c8] sm:$0xff]  ;;  %v260_v20 = vld [vmem:[#allocation7 + $0x5b0] sm:$0xff] }
  0x73   :  { %639 = vmatpush1.msra.mxu1 %v294_v21  ;;  %571 = vmatprep.subr.mxu0 %v227_v22  ;;  %v326_v21 = vld [vmem:[#allocation7 + $0x7c0] sm:$0xff]  ;;  %v259_v22 = vld [vmem:[#allocation7 + $0x5a8] sm:$0xff] }
  0x74   :  { %640 = vmatprep.subr.mxu1 %v293_v23  ;;  %572 = vmatpush1.msra.mxu0 %v226_v24  ;;  %v325_v23 = vld [vmem:[#allocation7 + $0x7b8] sm:$0xff]  ;;  %v258_v24 = vld [vmem:[#allocation7 + $0x5a0] sm:$0xff] }
  0x75   :  { %641 = vmatpush1.msra.mxu1 %v292_v25  ;;  %573 = vmatprep.subr.mxu0 %v225_v26  ;;  %v324_v25 = vld [vmem:[#allocation7 + $0x7b0] sm:$0xff]  ;;  %v257_v26 = vld [vmem:[#allocation7 + $0x598] sm:$0xff] }
  0x76   :  { %642 = vmatprep.subr.mxu1 %v291_v27  ;;  %574 = vmatpush1.msra.mxu0 %v224_v28  ;;  %v323_v27 = vld [vmem:[#allocation7 + $0x7a8] sm:$0xff]  ;;  %v256_v28 = vld [vmem:[#allocation7 + $0x590] sm:$0xff] }
  0x77   :  { %643 = vmatpush1.msra.mxu1 %v290_v29  ;;  %575 = vmatprep.subr.mxu0 %v223_v30  ;;  %v322_v29 = vld [vmem:[#allocation7 + $0x7a0] sm:$0xff]  ;;  %v255_v30 = vld [vmem:[#allocation7 + $0x588] sm:$0xff] }
  0x78   :  { %644 = vmatprep.subr.mxu1 %v289_v31  ;;  %576 = vmatpush1.msra.mxu0 %v222_v32  ;;  %v321_v31 = vld [vmem:[#allocation7 + $0x798] sm:$0xff]  ;;  %v254_v32 = vld [vmem:[#allocation7 + $0x580] sm:$0xff] }
  0x79   :  { %645 = vmatpush1.msra.mxu1 %v288_v33  ;;  %577 = vmatprep.subr.mxu0 %v221_v34  ;;  %v320_v33 = vld [vmem:[#allocation7 + $0x790] sm:$0xff]  ;;  %v253_v34 = vld [vmem:[#allocation7 + $0x578] sm:$0xff] }
  0x7a   :  { %646 = vmatprep.subr.mxu1 %v287_v35  ;;  %578 = vmatpush1.msra.mxu0 %v220_v36  ;;  %v319_v35 = vld [vmem:[#allocation7 + $0x788] sm:$0xff]  ;;  %v252_v36 = vld [vmem:[#allocation7 + $0x570] sm:$0xff] }
  0x7b   :  { %647 = vmatpush1.msra.mxu1 %v286_v37  ;;  %579 = vmatprep.subr.mxu0 %v219_v38  ;;  %v318_v37 = vld [vmem:[#allocation7 + $0x780] sm:$0xff]  ;;  %v251_v38 = vld [vmem:[#allocation7 + $0x568] sm:$0xff] }
  0x7c   :  { %648 = vmatprep.subr.mxu1 %v285_v39  ;;  %580 = vmatpush1.msra.mxu0 %v218_v40  ;;  %v317_v39 = vld [vmem:[#allocation7 + $0x778] sm:$0xff]  ;;  %v250_v40 = vld [vmem:[#allocation7 + $0x560] sm:$0xff] }
  0x7d   :  { %649 = vmatpush1.msra.mxu1 %v284_v41  ;;  %581 = vmatprep.subr.mxu0 %v217_v42  ;;  %v316_v41 = vld [vmem:[#allocation7 + $0x770] sm:$0xff]  ;;  %v249_v42 = vld [vmem:[#allocation7 + $0x558] sm:$0xff] }
  0x7e   :  { %650 = vmatprep.subr.mxu1 %v283_v43  ;;  %582 = vmatpush1.msra.mxu0 %v216_v44  ;;  %v315_v43 = vld [vmem:[#allocation7 + $0x768] sm:$0xff]  ;;  %v248_v44 = vld [vmem:[#allocation7 + $0x550] sm:$0xff] }
  0x7f   :  { %651 = vmatpush1.msra.mxu1 %v282_v45  ;;  %583 = vmatprep.subr.mxu0 %v215_v46  ;;  %v314_v45 = vld [vmem:[#allocation7 + $0x760] sm:$0xff]  ;;  %v247_v46 = vld [vmem:[#allocation7 + $0x548] sm:$0xff] }
  0x80   :  { %652 = vmatprep.subr.mxu1 %v281_v47  ;;  %584 = vmatpush1.msra.mxu0 %v214_v48  ;;  %v313_v47 = vld [vmem:[#allocation7 + $0x758] sm:$0xff]  ;;  %v246_v48 = vld [vmem:[#allocation7 + $0x540] sm:$0xff] }
  0x81   :  { %653 = vmatpush1.msra.mxu1 %v280_v49  ;;  %585 = vmatprep.subr.mxu0 %v213_v50  ;;  %v312_v49 = vld [vmem:[#allocation7 + $0x750] sm:$0xff]  ;;  %v245_v50 = vld [vmem:[#allocation7 + $0x538] sm:$0xff] }
  0x82   :  { %654 = vmatprep.subr.mxu1 %v279_v51  ;;  %586 = vmatpush1.msra.mxu0 %v212_v52  ;;  %v311_v51 = vld [vmem:[#allocation7 + $0x748] sm:$0xff]  ;;  %v244_v52 = vld [vmem:[#allocation7 + $0x530] sm:$0xff] }
  0x83   :  { %655 = vmatpush1.msra.mxu1 %v278_v53  ;;  %587 = vmatprep.subr.mxu0 %v211_v54  ;;  %v310_v53 = vld [vmem:[#allocation7 + $0x740] sm:$0xff]  ;;  %v243_v54 = vld [vmem:[#allocation7 + $0x528] sm:$0xff] }
  0x84   :  { %656 = vmatprep.subr.mxu1 %v277_v55  ;;  %588 = vmatpush1.msra.mxu0 %v210_v56  ;;  %v309_v55 = vld [vmem:[#allocation7 + $0x738] sm:$0xff]  ;;  %v242_v56 = vld [vmem:[#allocation7 + $0x520] sm:$0xff] }
  0x85   :  { %657 = vmatpush1.msra.mxu1 %v276_v57  ;;  %589 = vmatprep.subr.mxu0 %v209_v58  ;;  %v308_v57 = vld [vmem:[#allocation7 + $0x730] sm:$0xff]  ;;  %v241_v58 = vld [vmem:[#allocation7 + $0x518] sm:$0xff] }
  0x86   :  { %658 = vmatprep.subr.mxu1 %v275_v59  ;;  %590 = vmatpush1.msra.mxu0 %v208_v60  ;;  %v307_v59 = vld [vmem:[#allocation7 + $0x728] sm:$0xff]  ;;  %v240_v60 = vld [vmem:[#allocation7 + $0x510] sm:$0xff] }
  0x87   :  { %659 = vmatpush1.msra.mxu1 %v274_v61  ;;  %591 = vmatprep.subr.mxu0 %v207_v62  ;;  %v306_v61 = vld [vmem:[#allocation7 + $0x720] sm:$0xff]  ;;  %v239_v62 = vld [vmem:[#allocation7 + $0x508] sm:$0xff] }
  0x88   :  { %660 = vmatprep.subr.mxu1 %v273_v63  ;;  %592 = vmatpush1.msra.mxu0 %v206_v0  ;;  %v305_v63 = vld [vmem:[#allocation7 + $0x718] sm:$0xff]  ;;  %v238_v0 = vld [vmem:[#allocation7 + $0x500] sm:$0xff] }
  0x89   :  { %661 = vmatpush1.msra.mxu1 %v272_v1  ;;  %593 = vmatprep.subr.mxu0 %v269_v2  ;;  %v72_v1 = vld [vmem:[%s3155_s0 + $0x28] sm:$0xff]  ;;  %v304_v2 = vld [vmem:[#allocation7 + $0x710] sm:$0xff] }
  0x8a   :  { %662 = vmatprep.subr.mxu1 %v271_v3  ;;  %594 = vmatpush2.msra.mxu0 %v268_v4  ;;  %v71_v3 = vld [vmem:[%s3155_s0 + $0x20] sm:$0xff]  ;;  %v303_v4 = vld [vmem:[#allocation7 + $0x708] sm:$0xff] }
  0x8b   :  { %663 = vmatpush1.msra.mxu1 %v270_v5  ;;  %595 = vmatprep.subr.mxu0 %v267_v6  ;;  %v365_v5 = vld [vmem:[#allocation7 + $0x8f8] sm:$0xff]  ;;  %v302_v6 = vld [vmem:[#allocation7 + $0x700] sm:$0xff] }
  0x8c   :  { %664 = vmatprep.subr.mxu1 %v333_v7  ;;  %596 = vmatpush2.msra.mxu0 %v266_v8  ;;  %v74_v7 = vld [vmem:[%s3155_s0 + $0x38] sm:$0xff] }
  0x8d   :  { %665 = vmatpush2.msra.mxu1 %v332_v9  ;;  %597 = vmatprep.subr.mxu0 %v265_v10  ;;  %v364_v8 = vld [vmem:[#allocation7 + $0x8f0] sm:$0xff]  ;;  %v73_v9 = vld [vmem:[%s3155_s0 + $0x30] sm:$0xff] }
  0x8e   :  { %666 = vmatprep.subr.mxu1 %v331_v11  ;;  %598 = vmatpush2.msra.mxu0 %v264_v12  ;;  %v363_v10 = vld [vmem:[#allocation7 + $0x8e8] sm:$0xff]  ;;  %v362_v11 = vld [vmem:[#allocation7 + $0x8e0] sm:$0xff]  ;;  %v401_v12 = vld [vmem:[#allocation7 + $0xa18] sm:$0xff] }
  0x8f   :  { %667 = vmatpush2.msra.mxu1 %v330_v13  ;;  %599 = vmatprep.subr.mxu0 %v263_v14  ;;  %v361_v13 = vld [vmem:[#allocation7 + $0x8d8] sm:$0xff]  ;;  %v400_v14 = vld [vmem:[#allocation7 + $0xa10] sm:$0xff] }
  0x90   :  { %668 = vmatprep.subr.mxu1 %v329_v15  ;;  %600 = vmatpush2.msra.mxu0 %v262_v16  ;;  %v360_v15 = vld [vmem:[#allocation7 + $0x8d0] sm:$0xff]  ;;  %v399_v16 = vld [vmem:[#allocation7 + $0xa08] sm:$0xff] }
  0x91   :  { %669 = vmatpush2.msra.mxu1 %v328_v17  ;;  %601 = vmatprep.subr.mxu0 %v261_v18  ;;  %v359_v17 = vld [vmem:[#allocation7 + $0x8c8] sm:$0xff]  ;;  %v76_v18 = vld [vmem:[%s3155_s0 + $0x48] sm:$0xff] }
  0x92   :  { %670 = vmatprep.subr.mxu1 %v327_v19  ;;  %602 = vmatpush2.msra.mxu0 %v260_v20  ;;  %v358_v19 = vld [vmem:[#allocation7 + $0x8c0] sm:$0xff] }
  0x93   :  { %671 = vmatpush2.msra.mxu1 %v326_v21  ;;  %603 = vmatprep.subr.mxu0 %v259_v22  ;;  %v398_v20 = vld [vmem:[#allocation7 + $0xa00] sm:$0xff]  ;;  %v357_v21 = vld [vmem:[#allocation7 + $0x8b8] sm:$0xff]  ;;  %v356_v22 = vld [vmem:[#allocation7 + $0x8b0] sm:$0xff] }
  0x94   :  { %672 = vmatprep.subr.mxu1 %v325_v23  ;;  %604 = vmatpush2.msra.mxu0 %v258_v24  ;;  %v77_v23 = vld [vmem:[%s3155_s0 + $0x50] sm:$0xff] }
  0x95   :  { %673 = vmatpush2.msra.mxu1 %v324_v25  ;;  %605 = vmatprep.subr.mxu0 %v257_v26  ;;  %v355_v24 = vld [vmem:[#allocation7 + $0x8a8] sm:$0xff]  ;;  %v354_v25 = vld [vmem:[#allocation7 + $0x8a0] sm:$0xff]  ;;  %v2756_v26 = vmov 0.0  }
  0x96   :  { %674 = vmatprep.subr.mxu1 %v323_v27  ;;  %606 = vmatpush2.msra.mxu0 %v256_v28  ;;  %v353_v27 = vld [vmem:[#allocation7 + $0x898] sm:$0xff]  ;;  %v352_v28 = vld [vmem:[#allocation7 + $0x890] sm:$0xff] }
  0x97   :  { %675 = vmatpush2.msra.mxu1 %v322_v29  ;;  %607 = vmatprep.subr.mxu0 %v255_v30  ;;  %v351_v29 = vld [vmem:[#allocation7 + $0x888] sm:$0xff]  ;;  %v350_v30 = vld [vmem:[#allocation7 + $0x880] sm:$0xff] }
  0x98   :  { %676 = vmatprep.subr.mxu1 %v321_v31  ;;  %608 = vmatpush2.msra.mxu0 %v254_v32  ;;  %v349_v31 = vld [vmem:[#allocation7 + $0x878] sm:$0xff]  ;;  %v348_v32 = vld [vmem:[#allocation7 + $0x870] sm:$0xff] }
  0x99   :  { %677 = vmatpush2.msra.mxu1 %v320_v33  ;;  %609 = vmatprep.subr.mxu0 %v253_v34  ;;  %v347_v33 = vld [vmem:[#allocation7 + $0x868] sm:$0xff]  ;;  %v346_v34 = vld [vmem:[#allocation7 + $0x860] sm:$0xff] }
  0x9a   :  { %678 = vmatprep.subr.mxu1 %v319_v35  ;;  %610 = vmatpush2.msra.mxu0 %v252_v36  ;;  %v345_v35 = vld [vmem:[#allocation7 + $0x858] sm:$0xff]  ;;  %v344_v36 = vld [vmem:[#allocation7 + $0x850] sm:$0xff] }
  0x9b   :  { %679 = vmatpush2.msra.mxu1 %v318_v37  ;;  %611 = vmatprep.subr.mxu0 %v251_v38  ;;  %v343_v37 = vld [vmem:[#allocation7 + $0x848] sm:$0xff]  ;;  %v342_v38 = vld [vmem:[#allocation7 + $0x840] sm:$0xff] }
  0x9c   :  { %680 = vmatprep.subr.mxu1 %v317_v39  ;;  %612 = vmatpush2.msra.mxu0 %v250_v40  ;;  %v341_v39 = vld [vmem:[#allocation7 + $0x838] sm:$0xff]  ;;  %v340_v40 = vld [vmem:[#allocation7 + $0x830] sm:$0xff] }
  0x9d   :  { %681 = vmatpush2.msra.mxu1 %v316_v41  ;;  %613 = vmatprep.subr.mxu0 %v249_v42  ;;  %v339_v41 = vld [vmem:[#allocation7 + $0x828] sm:$0xff]  ;;  %v338_v42 = vld [vmem:[#allocation7 + $0x820] sm:$0xff] }
  0x9e   :  { %682 = vmatprep.subr.mxu1 %v315_v43  ;;  %614 = vmatpush2.msra.mxu0 %v248_v44  ;;  %v337_v43 = vld [vmem:[#allocation7 + $0x818] sm:$0xff]  ;;  %v336_v44 = vld [vmem:[#allocation7 + $0x810] sm:$0xff] }
  0x9f   :  { %683 = vmatpush2.msra.mxu1 %v314_v45  ;;  %615 = vmatprep.subr.mxu0 %v247_v46  ;;  %v335_v45 = vld [vmem:[#allocation7 + $0x808] sm:$0xff]  ;;  %v334_v46 = vld [vmem:[#allocation7 + $0x800] sm:$0xff] }
  0xa0   :  { %684 = vmatprep.subr.mxu1 %v313_v47  ;;  %616 = vmatpush2.msra.mxu0 %v246_v48  ;;  %v397_v47 = vld [vmem:[#allocation7 + $0x9f8] sm:$0xff]  ;;  %v396_v48 = vld [vmem:[#allocation7 + $0x9f0] sm:$0xff] }
  0xa1   :  { %685 = vmatpush2.msra.mxu1 %v312_v49  ;;  %617 = vmatprep.subr.mxu0 %v245_v50  ;;  %v395_v49 = vld [vmem:[#allocation7 + $0x9e8] sm:$0xff]  ;;  %v394_v50 = vld [vmem:[#allocation7 + $0x9e0] sm:$0xff] }
  0xa2   :  { %686 = vmatprep.subr.mxu1 %v311_v51  ;;  %618 = vmatpush2.msra.mxu0 %v244_v52  ;;  %v393_v51 = vld [vmem:[#allocation7 + $0x9d8] sm:$0xff]  ;;  %v392_v52 = vld [vmem:[#allocation7 + $0x9d0] sm:$0xff] }
  0xa3   :  { %687 = vmatpush2.msra.mxu1 %v310_v53  ;;  %619 = vmatprep.subr.mxu0 %v243_v54  ;;  %v391_v53 = vld [vmem:[#allocation7 + $0x9c8] sm:$0xff]  ;;  %v390_v54 = vld [vmem:[#allocation7 + $0x9c0] sm:$0xff] }
  0xa4   :  { %688 = vmatprep.subr.mxu1 %v309_v55  ;;  %620 = vmatpush2.msra.mxu0 %v242_v56  ;;  %v389_v55 = vld [vmem:[#allocation7 + $0x9b8] sm:$0xff]  ;;  %v388_v56 = vld [vmem:[#allocation7 + $0x9b0] sm:$0xff] }
  0xa5   :  { %689 = vmatpush2.msra.mxu1 %v308_v57  ;;  %621 = vmatprep.subr.mxu0 %v241_v58  ;;  %v387_v57 = vld [vmem:[#allocation7 + $0x9a8] sm:$0xff]  ;;  %v386_v58 = vld [vmem:[#allocation7 + $0x9a0] sm:$0xff] }
  0xa6   :  { %690 = vmatprep.subr.mxu1 %v307_v59  ;;  %622 = vmatpush2.msra.mxu0 %v240_v60  ;;  %v385_v59 = vld [vmem:[#allocation7 + $0x998] sm:$0xff]  ;;  %v384_v60 = vld [vmem:[#allocation7 + $0x990] sm:$0xff] }
  0xa7   :  { %691 = vmatpush2.msra.mxu1 %v306_v61  ;;  %623 = vmatprep.subr.mxu0 %v239_v62  ;;  %v383_v61 = vld [vmem:[#allocation7 + $0x988] sm:$0xff]  ;;  %v382_v62 = vld [vmem:[#allocation7 + $0x980] sm:$0xff] }
  0xa8   :  { %692 = vmatprep.subr.mxu1 %v305_v63  ;;  %624 = vmatpush2.msra.mxu0 %v238_v0  ;;  %v381_v63 = vld [vmem:[#allocation7 + $0x978] sm:$0xff]  ;;  %v380_v0 = vld [vmem:[#allocation7 + $0x970] sm:$0xff] }
  0xa9   :  { %625 = vmatprep.mubr.f32.mxu0 %v72_v1  ;;  %693 = vmatpush2.msra.mxu1 %v304_v2  ;;  %v379_v1 = vld [vmem:[#allocation7 + $0x968] sm:$0xff]  ;;  %v378_v2 = vld [vmem:[#allocation7 + $0x960] sm:$0xff] }
  0xaa   :  { %626 = vmatmul.mubr.f32.vlgmr.msra.gmra.mxu0 %v71_v3  ;;  %694 = vmatprep.subr.mxu1 %v303_v4  ;;  %v377_v3 = vld [vmem:[#allocation7 + $0x958] sm:$0xff]  ;;  %v376_v4 = vld [vmem:[#allocation7 + $0x950] sm:$0xff] }
  0xab   :  { %703 = vmatprep.subr.mxu0 %v365_v5  ;;  %695 = vmatpush2.msra.mxu1 %v302_v6  ;;  %v375_v5 = vld [vmem:[#allocation7 + $0x948] sm:$0xff]  ;;  %v374_v6 = vld [vmem:[#allocation7 + $0x940] sm:$0xff] }
  0xac   :  { %696 = vmatprep.mubr.f32.mxu1 %v74_v7  ;;  %704 = vmatpush1.msra.mxu0 %v364_v8  ;;  %v373_v7 = vld [vmem:[#allocation7 + $0x938] sm:$0xff]  ;;  %v372_v8 = vld [vmem:[#allocation7 + $0x930] sm:$0xff] }
  0xad   :  { %697 = vmatmul.mubr.f32.vlgmr.msra.gmra.mxu1 %v73_v9  ;;  %705 = vmatprep.subr.mxu0 %v363_v10  ;;  %v371_v9 = vld [vmem:[#allocation7 + $0x928] sm:$0xff]  ;;  %v370_v10 = vld [vmem:[#allocation7 + $0x920] sm:$0xff] }
  0xae   :  { %706 = vmatpush1.msra.mxu0 %v362_v11  ;;  %802 = vmatprep.subr.mxu1 %v401_v12  ;;  %v369_v11 = vld [vmem:[#allocation7 + $0x918] sm:$0xff]  ;;  %v368_v12 = vld [vmem:[#allocation7 + $0x910] sm:$0xff] }
  0xaf   :  { %707 = vmatprep.subr.mxu0 %v361_v13  ;;  %803 = vmatpush1.msra.mxu1 %v400_v14  ;;  %v367_v13 = vld [vmem:[#allocation7 + $0x908] sm:$0xff]  ;;  %v366_v14 = vld [vmem:[#allocation7 + $0x900] sm:$0xff] }
  0xb0   :  { %708 = vmatpush1.msra.mxu0 %v360_v15  ;;  %804 = vmatprep.subr.mxu1 %v399_v16  ;;  %v75_v15 = vld [vmem:[%s3155_s0 + $0x40] sm:$0xff]  ;;  %v878_v16 = vld [vmem:[#allocation7 + $0xc20] sm:$0xff] }
  0xb1   :  { %709 = vmatprep.subr.mxu0 %v359_v17  ;;  %767 = vmatprep.mubr.f32.mxu0 %v76_v18  ;;  %v862_v17 = vld [vmem:[#allocation7 + $0xb20] sm:$0xff]  ;;  %v877_v18 = vld [vmem:[#allocation7 + $0xc10] sm:$0xff] }
  0xb2   :  { %710 = vmatpush1.msra.mxu0 %v358_v19  ;;  %805 = vmatpush1.msra.mxu1 %v398_v20  ;;  %v861_v19 = vld [vmem:[#allocation7 + $0xb10] sm:$0xff]  ;;  %v876_v20 = vld [vmem:[#allocation7 + $0xc00] sm:$0xff] }
  0xb3   :  { %711 = vmatprep.subr.mxu0 %v357_v21  ;;  %838 = vmatprep.mubr.f32.mxu1 %v2756_v26  ;;  %v860_v21 = vld [vmem:[#allocation7 + $0xb00] sm:$0xff] }
  0xb4   :  { %712 = vmatpush1.msra.mxu0 %v356_v22  ;;  %2368 = vmatmul.mubr.msk.f32.vlgmr.msra.gmra.mxu1 %vm415_vm0, %v77_v23  ;;  %v875_v22 = vld [vmem:[#allocation7 + $0xbf0] sm:$0xff] }
  0xb5   :  { %713 = vmatprep.subr.mxu0 %v355_v24  ;;  %2384 = vmatprep.subr.mxu1 %v878_v16  ;;  %v859_v23 = vld [vmem:[#allocation7 + $0xaf0] sm:$0xff]  ;;  %v874_v24 = vld [vmem:[#allocation7 + $0xbe0] sm:$0xff] }
  0xb6   :  { %714 = vmatpush1.msra.mxu0 %v354_v25  ;;  %2385 = vmatpush3.msra.mxu1 %v862_v17  ;;  %v858_v25 = vld [vmem:[#allocation7 + $0xae0] sm:$0xff] }
  0xb7   :  { %715 = vmatprep.subr.mxu0 %v353_v27  ;;  %2386 = vmatprep.subr.mxu1 %v877_v18  ;;  %v873_v27 = vld [vmem:[#allocation7 + $0xbd0] sm:$0xff]  ;;  %v959_v18 = vld [vmem:[#allocation7 + $0xcc0] sm:$0xff] }
  0xb8   :  { %716 = vmatpush1.msra.mxu0 %v352_v28  ;;  %2387 = vmatpush3.msra.mxu1 %v861_v19  ;;  %v857_v28 = vld [vmem:[#allocation7 + $0xad0] sm:$0xff] }
  0xb9   :  { %717 = vmatprep.subr.mxu0 %v351_v29  ;;  %2388 = vmatprep.subr.mxu1 %v876_v20  ;;  %v872_v29 = vld [vmem:[#allocation7 + $0xbc0] sm:$0xff]  ;;  %v958_v19 = vld [vmem:[#allocation7 + $0xcb0] sm:$0xff] }
  0xba   :  { %718 = vmatpush1.msra.mxu0 %v350_v30  ;;  %2389 = vmatpush3.msra.mxu1 %v860_v21  ;;  %v856_v30 = vld [vmem:[#allocation7 + $0xac0] sm:$0xff]  ;;  %v956_v21 = vld [vmem:[#allocation7 + $0xc90] sm:$0xff] }
  0xbb   :  { %719 = vmatprep.subr.mxu0 %v349_v31  ;;  %2390 = vmatprep.subr.mxu1 %v875_v22  ;;  %v871_v31 = vld [vmem:[#allocation7 + $0xbb0] sm:$0xff]  ;;  %v957_v20 = vld [vmem:[#allocation7 + $0xca0] sm:$0xff] }
  0xbc   :  { %720 = vmatpush1.msra.mxu0 %v348_v32  ;;  %2391 = vmatpush3.msra.mxu1 %v859_v23  ;;  %v855_v32 = vld [vmem:[#allocation7 + $0xab0] sm:$0xff]  ;;  %v955_v22 = vld [vmem:[#allocation7 + $0xc80] sm:$0xff] }
  0xbd   :  { %721 = vmatprep.subr.mxu0 %v347_v33  ;;  %2392 = vmatprep.subr.mxu1 %v874_v24  ;;  %v870_v33 = vld [vmem:[#allocation7 + $0xba0] sm:$0xff]  ;;  %v954_v23 = vld [vmem:[#allocation7 + $0xc70] sm:$0xff] }
  0xbe   :  { %722 = vmatpush1.msra.mxu0 %v346_v34  ;;  %2393 = vmatpush3.msra.mxu1 %v858_v25  ;;  %v854_v34 = vld [vmem:[#allocation7 + $0xaa0] sm:$0xff]  ;;  %v952_v25 = vld [vmem:[#allocation7 + $0xc50] sm:$0xff] }
  0xbf   :  { %723 = vmatprep.subr.mxu0 %v345_v35  ;;  %2394 = vmatprep.subr.mxu1 %v873_v27  ;;  %v869_v35 = vld [vmem:[#allocation7 + $0xb90] sm:$0xff]  ;;  %v953_v24 = vld [vmem:[#allocation7 + $0xc60] sm:$0xff] }
  0xc0   :  { %724 = vmatpush1.msra.mxu0 %v344_v36  ;;  %2395 = vmatpush3.msra.mxu1 %v857_v28  ;;  %v853_v36 = vld [vmem:[#allocation7 + $0xa90] sm:$0xff]  ;;  %v951_v27 = vld [vmem:[#allocation7 + $0xc40] sm:$0xff] }
  0xc1   :  { %725 = vmatprep.subr.mxu0 %v343_v37  ;;  %2396 = vmatprep.subr.mxu1 %v872_v29  ;;  %v868_v37 = vld [vmem:[#allocation7 + $0xb80] sm:$0xff]  ;;  %v1121_v28 = vld [vmem:[#allocation7 + $0xd30] sm:$0xff] }
  0xc2   :  { %726 = vmatpush1.msra.mxu0 %v342_v38  ;;  %2397 = vmatpush3.msra.mxu1 %v856_v30  ;;  %v852_v38 = vld [vmem:[#allocation7 + $0xa80] sm:$0xff]  ;;  %v879_v30 = vld [vmem:[#allocation7 + $0xc30] ss:$0 sm:$0xff] }
  0xc3   :  { %727 = vmatprep.subr.mxu0 %v341_v39  ;;  %2398 = vmatprep.subr.mxu1 %v871_v31  ;;  %v867_v39 = vld [vmem:[#allocation7 + $0xb70] sm:$0xff] }
  0xc4   :  { %728 = vmatpush1.msra.mxu0 %v340_v40  ;;  %2399 = vmatpush3.msra.mxu1 %v855_v32  ;;  %v851_v40 = vld [vmem:[#allocation7 + $0xa70] sm:$0xff] }
  0xc5   :  { %729 = vmatprep.subr.mxu0 %v339_v41  ;;  %2400 = vmatprep.subr.mxu1 %v870_v33  ;;  %v866_v41 = vld [vmem:[#allocation7 + $0xb60] sm:$0xff] }
  0xc6   :  { %730 = vmatpush1.msra.mxu0 %v338_v42  ;;  %2401 = vmatpush3.msra.mxu1 %v854_v34  ;;  %v850_v42 = vld [vmem:[#allocation7 + $0xa60] sm:$0xff] }
  0xc7   :  { %731 = vmatprep.subr.mxu0 %v337_v43  ;;  %2402 = vmatprep.subr.mxu1 %v869_v35  ;;  %v865_v43 = vld [vmem:[#allocation7 + $0xb50] sm:$0xff]  ;;  %v1037_v35 = vld [vmem:[#allocation7 + $0xce0] sm:$0x3] }
  0xc8   :  { %732 = vmatpush1.msra.mxu0 %v336_v44  ;;  %2403 = vmatpush3.msra.mxu1 %v853_v36  ;;  %v849_v44 = vld [vmem:[#allocation7 + $0xa50] sm:$0xff]  ;;  %v1036_v36 = vld [vmem:[%s3156_s1] sm:$0xff]  ;;  %s2759_s1 = smov 64  }
  0xc9   :  { %733 = vmatprep.subr.mxu0 %v335_v45  ;;  %2404 = vmatprep.subr.mxu1 %v868_v37  ;;  %v864_v45 = vld [vmem:[#allocation7 + $0xb40] sm:$0xff] }
  0xca   :  { %734 = vmatpush1.msra.mxu0 %v334_v46  ;;  %2405 = vmatpush3.msra.mxu1 %v852_v38  ;;  %v848_v46 = vld [vmem:[#allocation7 + $0xa40] sm:$0xff]  ;;  %v1125_v38 = vld [vmem:[#allocation7 + $0xd70] sm:$0xff] }
  0xcb   :  { %735 = vmatprep.subr.mxu0 %v397_v47  ;;  %2406 = vmatprep.subr.mxu1 %v867_v39  ;;  %v863_v47 = vld [vmem:[#allocation7 + $0xb30] sm:$0xff]  ;;  %v1120_v37 = vld [vmem:[#allocation7 + $0xd20] sm:$0xff] }
  0xcc   :  { %736 = vmatpush2.msra.mxu0 %v396_v48  ;;  %2407 = vmatpush3.msra.mxu1 %v851_v40  ;;  %v847_v48 = vld [vmem:[#allocation7 + $0xa30] sm:$0xff]  ;;  %v1124_v40 = vld [vmem:[#allocation7 + $0xd60] sm:$0xff] }
  0xcd   :  { %737 = vmatprep.subr.mxu0 %v395_v49  ;;  %2408 = vmatprep.subr.mxu1 %v866_v41  ;;  %v405_v49 = vlaneseq  ;;  %v1119_v39 = vld [vmem:[#allocation7 + $0xd10] sm:$0xff]  ;;  %v1118_v41 = vld [vmem:[#allocation7 + $0xd00] sm:$0xff] }
  0xce   :  { %738 = vmatpush2.msra.mxu0 %v394_v50  ;;  %2409 = vmatpush3.msra.mxu1 %v850_v42  ;;  %v1123_v42 = vld [vmem:[#allocation7 + $0xd50] sm:$0xff] }
  0xcf   :  { %739 = vmatprep.subr.mxu0 %v393_v51  ;;  %2410 = vmatprep.subr.mxu1 %v865_v43  ;;  %v406_v50 = vshrl.u32 %v405_v49, 7  ;;  %v1122_v43 = vld [vmem:[#allocation7 + $0xd40] sm:$0xff] }
  0xd0   :  { %740 = vmatpush2.msra.mxu0 %v392_v52  ;;  %2411 = vmatpush3.msra.mxu1 %v849_v44  ;;  %v403_v52 = vld [vmem:[#allocation7 + $0xa20] ss:$8 sm:$0x3] }
  0xd1   :  { %741 = vmatprep.subr.mxu0 %v391_v53  ;;  %2412 = vmatprep.subr.mxu1 %v864_v45  ;;  %v407_v51 = vsub.s32 0, %v406_v50  ;;  %v411_v53 = vsub.s32 1, %v406_v50  ;;  %v2890_v44 = vld [vmem:[#allocation7 + $0xe40] sm:$0xff]  ;;  %v960_v45 = vld [vmem:[#allocation7 + $0xcd0] ss:$0 sm:$0xff] }
  0xd2   :  { %742 = vmatpush2.msra.mxu0 %v390_v54  ;;  %2413 = vmatpush3.msra.mxu1 %v848_v46  ;;  %v1038_v50 = vld [vmem:[#allocation7 + $0xcf0] ss:$0 sm:$0xff] }
  0xd3   :  { %743 = vmatprep.subr.mxu0 %v389_v55  ;;  %2414 = vmatprep.subr.mxu1 %v863_v47  ;;  %v408_v55 = vrot.slane %v403_v52, %v407_v51 }
  0xd4   :  { %744 = vmatpush2.msra.mxu0 %v388_v56  ;;  %2415 = vmatpush3.msra.mxu1 %v847_v48  ;;  %v412_v56 = vrot.slane %v403_v52, %v411_v53 }
  0xd5   :  { %745 = vmatprep.subr.mxu0 %v387_v57  ;;  %2466 = vmatprep.subr.mxu1 %v2756_v26 }
  0xd6   :  { %746 = vmatpush2.msra.mxu0 %v386_v58 }
  0xd7   :  { %747 = vmatprep.subr.mxu0 %v385_v59 }
  0xd8   :  { %748 = vmatpush2.msra.mxu0 %v384_v60 }
  0xd9   :  { %749 = vmatprep.subr.mxu0 %v383_v61 }
  0xda   :  { %750 = vmatpush2.msra.mxu0 %v382_v62 }
  0xdb   :  { %751 = vmatprep.subr.mxu0 %v381_v63 }
  0xdc   :  { %752 = vmatpush2.msra.mxu0 %v380_v0 }
  0xdd   :  { %753 = vmatprep.subr.mxu0 %v379_v1 }
  0xde   :  { %754 = vmatpush2.msra.mxu0 %v378_v2 }
  0xdf   :  { %755 = vmatprep.subr.mxu0 %v377_v3 }
  0xe0   :  { %756 = vmatpush2.msra.mxu0 %v376_v4 }
  0xe1   :  { %757 = vmatprep.subr.mxu0 %v375_v5 }
  0xe2   :  { %758 = vmatpush2.msra.mxu0 %v374_v6 }
  0xe3   :  { %759 = vmatprep.subr.mxu0 %v373_v7 }
  0xe4   :  { %760 = vmatpush2.msra.mxu0 %v372_v8 }
  0xe5   :  { %761 = vmatprep.subr.mxu0 %v371_v9 }
  0xe6   :  { %762 = vmatpush2.msra.mxu0 %v370_v10 }
  0xe7   :  { %763 = vmatprep.subr.mxu0 %v369_v11 }
  0xe8   :  { %764 = vmatpush2.msra.mxu0 %v368_v12 }
  0xe9   :  { %765 = vmatprep.subr.mxu0 %v367_v13 }
  0xea   :  { %766 = vmatpush2.msra.mxu0 %v366_v14 }
  0xeb   :  { %768 = vmatmul.mubr.f32.vlgmr.msra.gmra.mxu0 %v75_v15  ;;  %2503 = vmatprep.subr.mxu0 %v2756_v26 }
  0xec   :  { %2511 = vmatprep.mubr.msk.f32.mxu0 %vm2757_vm1, %v2756_v26  ;;  %2504 = vmatpush3.msra.mxu0 %v1121_v28  ;;  %v2950_v28 = vld [vmem:[#allocation7 + $0xe00] sm:$0xff] }
  0xed   :  { %2505 = vmatprep.subr.mxu0 %v2756_v26 }
  0xee   :  { %2506 = vmatpush3.msra.mxu0 %v1120_v37 }
  0xef   :  { %2507 = vmatprep.subr.mxu0 %v2756_v26 }
  0xf0   :  { %2508 = vmatpush3.msra.mxu0 %v1119_v39 }
  0xf1   :  { %2509 = vmatprep.subr.mxu0 %v2756_v26 }
  0xf2   :  { %2510 = vmatpush3.msra.mxu0 %v1118_v41 }
  0xf3   :  { %1437 = vmatprep.subr.mxu0 %v2890_v44 }
 0x128   :  { %v485_v54 = vpop.f32.mrf.mxu0 }
 0x129   :  { %v486_v59 = vadd.f32 %v485_v54, %v408_v55  ;;  %v2895_v54 = vld [vmem:[#allocation7 + $0xdb0] sm:$0xff] }
 0x12a   :  { %v487_v57 = vpop.f32.mrf.mxu0 }
 0x12b   :  { %v556_v58 = vpop.f32.mrf.mxu1  ;;  %v488_v61 = vadd.f32 %v487_v57, %v412_v56  ;;  %v2897_v56 = vld [vmem:[#allocation7 + $0xe30] sm:$0xff] }
 0x12c   :  { %v557_v63 = vadd.f32 %v556_v58, %v486_v59  ;;  %v2901_v58 = vld [vmem:[#allocation7 + $0xda0] sm:$0xff]  ;;  %v1297_v59 = vld [vmem:[#allocation2 + $0x2] sm:$0x3] }
 0x12d   :  { %v558_v62 = vpop.f32.mrf.mxu1 }
 0x12e   :  { %v559_v2 = vadd.f32 %v558_v62, %v488_v61  ;;  %v2910_v61 = vld [vmem:[#allocation7 + $0xd90] sm:$0xff]  ;;  %v1302_v62 = vrot.slane %v1297_v59, 6 }
 0x16a   :  { %v627_v60 = vpop.f32.mrf.mxu0 }
 0x16b   :  { %v628_v3 = vadd.f32 %v627_v60, %v557_v63  ;;  %v2904_v60 = vld [vmem:[#allocation7 + $0xe20] sm:$0xff]  ;;  %v2914_v63 = vld [vmem:[#allocation7 + $0xe10] sm:$0xff] }
 0x16c   :  { %v629_v0 = vpop.f32.mrf.mxu0 }
 0x16d   :  { %v698_v1 = vpop.f32.mrf.mxu1  ;;  %v630_v4 = vadd.f32 %v629_v0, %v559_v2  ;;  %v1295_v0 = vld [vmem:[#allocation2] sm:$0x3] }
 0x16e   :  { %v699_v6 = vadd.f32 %v698_v1, %v628_v3  ;;  %v2918_v1 = vld [vmem:[#allocation7 + $0xd80] sm:$0xff]  ;;  %v1304_v2 = vsel %vm1043_vm3, %v1295_v0, %v1302_v62 }
 0x16f   :  { %v700_v5 = vpop.f32.mrf.mxu1 }
 0x170   :  { %v701_v9 = vadd.f32 %v700_v5, %v630_v4  ;;  %v1289_v4 = vand.u32 127, %v405_v49 }
 0x172   :  { %vm1290_vm6 = vcmp.ge.s32.totalorder %v1289_v4, 64  ;;  %vm1291_vm7 = vcmp.lt.s32.totalorder %v1289_v4, 96 }
 0x173   :  { %vm1292_vm8 = vmand %vm1290_vm6, %vm1291_vm7 }
 0x174   :  { %v840_v8 = vpop.f32.mrf.mxu1 }
 0x176   :  { %v842_v14 = vpop.f32.mrf.mxu1 }
 0x1ab   :  { %v769_v7 = vpop.f32.mrf.mxu0 }
 0x1ac   :  { %v770_v10 = vadd.f32 %v769_v7, %v699_v6 }
 0x1ad   :  { %v771_v11 = vpop.f32.mrf.mxu0 }
 0x1ae   :  { %v772_v12 = vadd.f32 %v771_v11, %v701_v9  ;;  %v841_v13 = vadd.f32 %v840_v8, %v770_v10  ;;  %v1273_v9 = vld [vmem:[#allocation7 + $0xdc0] ss:$0 sm:$0xff]  ;;  %v2758_v11 = vmov 0.5  }
 0x1b0   :  { %v843_v15 = vadd.f32 %v842_v14, %v772_v12  ;;  %v845_v17 = vmax.f32 %v841_v13, 0.0  ;;  %v2935_v12 = vsel %vm1292_vm8, 1.0, %v2758_v11 }
 0x1b2   :  { %v846_v16 = vmax.f32 %v843_v15, 0.0 }
 0x1b4   :  { %944 = vmatprep.mubr.f32.mxu1 %v846_v16 }
 0x1b5   :  { %945 = vmatmul.mubr.f32.vlgmr.msra.gmra.mxu1 %v845_v17  ;;  %v2939_v17 = vsel %vm1292_vm8, 0.0, %v2758_v11 }
 0x1b6   :  { %2467 = vmatpush3.msra.mxu1 %v959_v18  ;;  %2484 = vmatprep.mubr.msk.f32.mxu1 %vm2757_vm1, %v2756_v26 }
 0x1b7   :  { %2468 = vmatprep.subr.mxu1 %v2756_v26 }
 0x1b8   :  { %2469 = vmatpush3.msra.mxu1 %v958_v19 }
 0x1b9   :  { %2470 = vmatprep.subr.mxu1 %v2756_v26 }
 0x1ba   :  { %2471 = vmatpush3.msra.mxu1 %v957_v20  ;;  %v1298_v20 = vld [vmem:[#allocation5] sm:$0x3] }
 0x1bb   :  { %2472 = vmatprep.subr.mxu1 %v2756_v26 }
 0x1bc   :  { %2473 = vmatpush3.msra.mxu1 %v956_v21 }
 0x1bd   :  { %2474 = vmatprep.subr.mxu1 %v2756_v26 }
 0x1be   :  { %2475 = vmatpush3.msra.mxu1 %v955_v22 }
 0x1bf   :  { %2476 = vmatprep.subr.mxu1 %v2756_v26 }
 0x1c0   :  { %2477 = vmatpush3.msra.mxu1 %v954_v23 }
 0x1c1   :  { %2478 = vmatprep.subr.mxu1 %v2756_v26 }
 0x1c2   :  { %2479 = vmatpush3.msra.mxu1 %v953_v24 }
 0x1c3   :  { %2480 = vmatprep.subr.mxu1 %v2756_v26 }
 0x1c4   :  { %2481 = vmatpush3.msra.mxu1 %v952_v25 }
 0x1c5   :  { %2482 = vmatprep.subr.mxu1 %v2756_v26 }
 0x1c6   :  { %2483 = vmatpush3.msra.mxu1 %v951_v27 }
 0x1c7   :  { %2487 = vmatprep.subr.mxu1 %v2756_v26 }
 0x275   :  { %v2416_v29 = vpop.f32.mrf.mxu1 }
 0x277   :  { %v2417_v31 = vpop.f32.mrf.mxu1 }
 0x278   :  { %v2418_v32 = vadd.f32 %v2417_v31, %v2416_v29  ;;  %v2952_v29 = vld [vmem:[#allocation7 + $0xdf0] sm:$0xff] }
 0x279   :  { %v2960_v31 = vld [vmem:[#allocation7 + $0xdd0] sm:$0xff] }
 0x27a   :  { %v947_v33 = vadd.f32 %v2418_v32, %v879_v30  ;;  %v2956_v30 = vld [vmem:[#allocation7 + $0xde0] sm:$0xff] }
 0x27c   :  { %v950_v34 = vmax.f32 %v947_v33, 0.0 }
 0x27e   :  { %2485 = vmatmul.mubr.msk.f32.vlgmr.msra.gmra.mxu1 %vm961_vm2, %v950_v34 }
 0x27f   :  { %2488 = vmatpush3.msk.msra.mxu1 %vm1043_vm3, %v1037_v35  ;;  %2489 = vmatprep.mubr.msk.f32.mxu1 %vm2757_vm1, %v2756_v26 }
 0x280   :  { %2492 = vmatprep.subr.mxu1 %v2756_v26 }
 0x282   :  { %2490 = vmatmul.mubr.msk.f32.vlgmr.msra.gmra.mxu1 %vm1039_vm4, %v1036_v36 }
 0x283   :  { %2500 = vmatprep.mubr.msk.f32.mxu1 %vm2757_vm1, %v2756_v26  ;;  %2493 = vmatpush3.msra.mxu1 %v1125_v38 }
 0x284   :  { %2494 = vmatprep.subr.mxu1 %v2756_v26 }
 0x285   :  { %2495 = vmatpush3.msra.mxu1 %v1124_v40 }
 0x286   :  { %2496 = vmatprep.subr.mxu1 %v2756_v26 }
 0x287   :  { %2497 = vmatpush3.msra.mxu1 %v1123_v42 }
 0x288   :  { %2498 = vmatprep.subr.mxu1 %v2756_v26 }
 0x289   :  { %2499 = vmatpush3.msra.mxu1 %v1122_v43  ;;  %v2991_v43 = vld [vmem:[#allocation7 + $0xe50] ss:$0 sm:$0xff] }
 0x28a   :  { %1332 = vmatprep.subr.mxu1 %v2890_v44 }
 0x33e   :  { %v1031_v46 = vpop.f32.mrf.mxu1 }
 0x33f   :  { %v1032_v47 = vadd.f32 %v1031_v46, %v960_v45 }
 0x340   :  { %v2486_v48 = vpop.f32.mrf.mxu1 }
 0x341   :  { %v1035_v51 = vmax.f32 %v1032_v47, 0.0 }
 0x342   :  { %v1113_v52 = vpop.f32.mrf.mxu1 }
 0x343   :  { %v1114_v53 = vadd.f32 %v1113_v52, %v1038_v50  ;;  %2512 = vmatmul.mubr.msk.f32.vlgmr.msra.gmra.mxu0 %vm1126_vm5, %v1035_v51 }
 0x344   :  { %v2491_v55 = vpop.f32.mrf.mxu1  ;;  %1438 = vmatpush1.msra.mxu0 %v2895_v54  ;;  %1477 = vmatprep.mubr.f32.mxu0 %v2756_v26 }
 0x345   :  { %v1117_v57 = vmax.f32 %v1114_v53, 0.0  ;;  %1439 = vmatprep.subr.mxu0 %v2897_v56  ;;  %v1300_v55 = vld [vmem:[#allocation5 + $0x2] sm:$0x3] }
 0x346   :  { %1440 = vmatpush1.msra.mxu0 %v2901_v58 }
 0x347   :  { %2501 = vmatmul.mubr.msk.f32.vlgmr.msra.gmra.mxu1 %vm1126_vm5, %v1117_v57  ;;  %1441 = vmatprep.subr.mxu0 %v2904_v60 }
 0x348   :  { %1333 = vmatpush1.msra.mxu1 %v2895_v54  ;;  %1372 = vmatprep.mubr.f32.mxu1 %v2756_v26 }
 0x349   :  { %1334 = vmatprep.subr.mxu1 %v2897_v56  ;;  %1442 = vmatpush1.msra.mxu0 %v2910_v61 }
 0x34a   :  { %1335 = vmatpush1.msra.mxu1 %v2901_v58  ;;  %1443 = vmatprep.subr.mxu0 %v2914_v63 }
 0x34b   :  { %1336 = vmatprep.subr.mxu1 %v2904_v60  ;;  %1444 = vmatpush1.msra.mxu0 %v2918_v1 }
 0x34c   :  { %1337 = vmatpush1.msra.mxu1 %v2910_v61  ;;  %1640 = vmatprep.subr.mxu0 %v2890_v44 }
 0x34d   :  { %1338 = vmatprep.subr.mxu1 %v2914_v63 }
 0x34e   :  { %1339 = vmatpush1.msra.mxu1 %v2918_v1 }
 0x34f   :  { %2374 = vmatmul.mubr.msk.f32.vlgmr.msra.gmra.mxu1 %vm1126_vm5, %v1304_v2  ;;  %2514 = vmatprep.subr.mxu1 %v2756_v26 }
 0x350   :  { %2522 = vmatprep.mubr.msk.f32.mxu1 %vm2757_vm1, %v2756_v26  ;;  %2515 = vmatpush3.msra.mxu1 %v2950_v28 }
 0x351   :  { %2516 = vmatprep.subr.mxu1 %v2756_v26 }
 0x352   :  { %2517 = vmatpush3.msra.mxu1 %v2952_v29 }
 0x353   :  { %2518 = vmatprep.subr.mxu1 %v2756_v26 }
 0x354   :  { %2519 = vmatpush3.msra.mxu1 %v2956_v30 }
 0x355   :  { %2520 = vmatprep.subr.mxu1 %v2756_v26 }
 0x356   :  { %2521 = vmatpush3.msra.mxu1 %v2960_v31 }
 0x357   :  { %2525 = vmatprep.subr.mxu1 %v2756_v26 }
 0x403   :  { %v1269_v3 = vpop.f32.mrf.mxu0 }
 0x405   :  { %v2513_v5 = vpop.f32.mrf.mxu0 }
 0x407   :  { %v1196_v6 = vpop.f32.mrf.mxu1 }
 0x408   :  { %v1270_v8 = vadd.f32 %v1269_v3, %v1196_v6 }
 0x409   :  { %v2502_v7 = vpop.f32.mrf.mxu1 }
 0x40a   :  { %v2933_v10 = vadd.f32 %v1273_v9, %v1270_v8 }
 0x40c   :  { %v1555_v38 = vrot.slane %v2933_v10, 2 }
 0x40f   :  { %v1374_v13 = vpop.f32.mrf.mxu1 }
 0x410   :  { %v1378_v14 = vadd.f32 %v1374_v13, %v2933_v10 }
 0x411   :  { %v1376_v15 = vpop.f32.mrf.mxu1 }
 0x412   :  { %v1379_v16 = vmul.f32 %v1378_v14, %v2935_v12 }
 0x414   :  { %2585 = vtanh.f32 %v1379_v16 }
 0x421   :  { %v2586_v49 = vpop.eup %2585 }
 0x422   :  { %v1381_v18 = vmul.f32 %v2586_v49, %v2935_v12 }
 0x424   :  { %v1382_v19 = vadd.f32 %v1381_v18, %v2939_v17 }
 0x426   :  { %1389 = vrot.lane.b32.xlu0 %v1382_v19, %s2759_s1 }
 0x42a   :  { %1384 = vrot.lane.b32.xlu0 %v1298_v20, %s2751_s10 }
 0x42e   :  { %1404 = vrot.lane.b32.xlu0 %v1302_v62, %s2760_s2  ;;  %v1589_v62 = vrot.slane %v1300_v55, 6 }
 0x498   :  { %v1390_v21 = vpop.permute.xlu0 %1389 }
 0x499   :  { %v1392_v22 = vmul.f32 %v1390_v21, %v1382_v19 }
 0x49b   :  { %1394 = vrot.lane.b32.xlu1 %v1392_v22, %s2751_s10 }
 0x49c   :  { %v1385_v23 = vpop.permute.xlu0 %1384 }
 0x49d   :  { %v1387_v24 = vmul.f32 %v1385_v23, %v1382_v19 }
 0x4a0   :  { %v1405_v34 = vpop.permute.xlu0 %1404 }
 0x50d   :  { %v1395_v25 = vpop.permute.xlu1 %1394 }
 0x50e   :  { %v2947_v27 = vadd.f32 %v1395_v25, %v1387_v24  ;;  %v1757_v24 = vrot.slane %v2933_v10, 4 }
 0x510   :  { %2587 = vtanh.f32 %v2947_v27 }
 0x51d   :  { %v2588_v32 = vpop.eup %2587 }
 0x51e   :  { %1400 = vrot.lane.b32.xlu1 %v2588_v32, %s2759_s1 }
 0x590   :  { %v1401_v33 = vpop.permute.xlu1 %1400 }
 0x591   :  { %v1403_v35 = vmul.f32 %v1401_v33, %v1382_v19 }
 0x593   :  { %v1407_v36 = vsel %vm1043_vm3, %v1403_v35, %v1405_v34 }
 0x594   :  { %1409 = vrot.lane.b32.xlu1 %v1407_v36, %s2751_s10 }
 0x606   :  { %v1410_v37 = vpop.permute.xlu1 %1409 }
 0x607   :  { %2375 = vmatmul.mubr.msk.f32.vlgmr.msra.gmra.mxu0 %vm1126_vm5, %v1410_v37  ;;  %2523 = vmatmul.mubr.msk.f32.vlgmr.msra.gmra.mxu1 %vm1126_vm5, %v1410_v37 }
 0x608   :  { %1641 = vmatpush1.msra.mxu0 %v2895_v54  ;;  %2526 = vmatpush3.msra.mxu1 %v2950_v28 }
 0x609   :  { %1642 = vmatprep.subr.mxu0 %v2897_v56  ;;  %2527 = vmatprep.subr.mxu1 %v2756_v26 }
 0x60a   :  { %1643 = vmatpush1.msra.mxu0 %v2901_v58  ;;  %2528 = vmatpush3.msra.mxu1 %v2952_v29 }
 0x60b   :  { %1644 = vmatprep.subr.mxu0 %v2904_v60  ;;  %2529 = vmatprep.subr.mxu1 %v2756_v26 }
 0x60c   :  { %1645 = vmatpush1.msra.mxu0 %v2910_v61  ;;  %2530 = vmatpush3.msra.mxu1 %v2956_v30 }
 0x60d   :  { %1646 = vmatprep.subr.mxu0 %v2914_v63  ;;  %2531 = vmatprep.subr.mxu1 %v2756_v26 }
 0x60e   :  { %1647 = vmatpush1.msra.mxu0 %v2918_v1  ;;  %1680 = vmatprep.mubr.f32.mxu0 %v2756_v26 }
 0x60f   :  { %2532 = vmatpush3.msra.mxu1 %v2960_v31  ;;  %2533 = vmatprep.mubr.msk.f32.mxu1 %vm2757_vm1, %v2756_v26 }
 0x610   :  { %1837 = vmatprep.subr.mxu0 %v2890_v44  ;;  %2536 = vmatprep.subr.mxu1 %v2756_v26 }
 0x6c7   :  { %v1479_v39 = vpop.f32.mrf.mxu0  ;;  %v1550_v40 = vpop.f32.mrf.mxu1 }
 0x6c8   :  { %v1557_v41 = vadd.f32 %v1555_v38, %v1479_v39  ;;  %v1580_v42 = vrot.slane %v1550_v40, 6 }
 0x6c9   :  { %v1481_v45 = vpop.f32.mrf.mxu0  ;;  %v2524_v46 = vpop.f32.mrf.mxu1 }
 0x6ca   :  { %v1558_v47 = vmul.f32 %v1557_v41, %v2935_v12  ;;  %v1582_v48 = vadd.f32 %v1580_v42, %v1481_v45 }
 0x6cc   :  { %2589 = vtanh.f32 %v1558_v47  ;;  %v1583_v50 = vadd.f32 %v1582_v48, %v2991_v43 }
 0x6ce   :  { %v1584_v51 = vmul.f32 %v1583_v50, %v2935_v12 }
 0x6d0   :  { %2591 = vtanh.f32 %v1584_v51 }
 0x6d9   :  { %v2590_v52 = vpop.eup %2589 }
 0x6da   :  { %v1560_v53 = vmul.f32 %v2590_v52, %v2935_v12 }
 0x6dc   :  { %v1561_v57 = vadd.f32 %v1560_v53, %v2939_v17 }
 0x6dd   :  { %v2592_v59 = vpop.eup %2591 }
 0x6de   :  { %1564 = vrot.lane.b32.xlu0 %v1561_v57, %s2759_s1  ;;  %v1586_v0 = vmul.f32 %v2592_v59, %v2935_v12  ;;  %v1562_v7 = vmul.f32 %v1561_v57, %v2947_v27 }
 0x6e0   :  { %v1587_v2 = vadd.f32 %v1586_v0, %v2939_v17 }
 0x6e2   :  { %1590 = vrot.lane.b32.xlu0 %v1589_v62, %s2751_s10  ;;  %1595 = vrot.lane.b32.xlu1 %v1587_v2, %s2759_s1 }
 0x750   :  { %v1565_v3 = vpop.permute.xlu0 %1564 }
 0x751   :  { %v1567_v4 = vmul.f32 %v1565_v3, %v1561_v57 }
 0x753   :  { %1569 = vrot.lane.b32.xlu1 %v1567_v4, %s2751_s10 }
 0x754   :  { %v1596_v5 = vpop.permute.xlu1 %1595  ;;  %v1591_v8 = vpop.permute.xlu0 %1590 }
 0x755   :  { %v1598_v6 = vmul.f32 %v1596_v5, %v1587_v2  ;;  %v1593_v13 = vmul.f32 %v1591_v8, %v1587_v2 }
 0x757   :  { %1600 = vrot.lane.b32.xlu0 %v1598_v6, %s2751_s10 }
 0x7c5   :  { %v1570_v9 = vpop.permute.xlu1 %1569 }
 0x7c6   :  { %v3006_v11 = vadd.f32 %v1570_v9, %v1562_v7 }
 0x7c8   :  { %2593 = vtanh.f32 %v3006_v11 }
 0x7c9   :  { %v1601_v14 = vpop.permute.xlu0 %1600 }
 0x7ca   :  { %v3009_v15 = vadd.f32 %v1601_v14, %v1593_v13 }
 0x7cc   :  { %2595 = vtanh.f32 %v3009_v15 }
 0x7d5   :  { %v2594_v16 = vpop.eup %2593 }
 0x7d6   :  { %1575 = vrot.lane.b32.xlu1 %v2594_v16, %s2759_s1 }
 0x7d9   :  { %v2596_v49 = vpop.eup %2595 }
 0x7da   :  { %1606 = vrot.lane.b32.xlu0 %v2596_v49, %s2759_s1 }
 0x848   :  { %v1576_v18 = vpop.permute.xlu1 %1575 }
 0x849   :  { %v1578_v20 = vmul.f32 %v1576_v18, %v1561_v57 }
 0x84c   :  { %v1607_v19 = vpop.permute.xlu0 %1606 }
 0x84d   :  { %v3014_v21 = vmul.f32 %v1607_v19, %v1587_v2 }
 0x84f   :  { %v1610_v22 = vsel %vm1043_vm3, %v1578_v20, %v3014_v21  ;;  %v2201_v5 = vrot.slane %v3014_v21, 2 }
 0x850   :  { %1612 = vrot.lane.b32.xlu1 %v1610_v22, %s2751_s10 }
 0x8c2   :  { %v1613_v23 = vpop.permute.xlu1 %1612 }
 0x8c3   :  { %2377 = vmatmul.mubr.msk.f32.vlgmr.msra.gmra.mxu0 %vm1126_vm5, %v1613_v23  ;;  %2534 = vmatmul.mubr.msk.f32.vlgmr.msra.gmra.mxu1 %vm1126_vm5, %v1613_v23 }
 0x8c4   :  { %1838 = vmatpush1.msra.mxu0 %v2895_v54  ;;  %2537 = vmatpush3.msra.mxu1 %v2950_v28 }
 0x8c5   :  { %1839 = vmatprep.subr.mxu0 %v2897_v56  ;;  %2538 = vmatprep.subr.mxu1 %v2756_v26 }
 0x8c6   :  { %1840 = vmatpush1.msra.mxu0 %v2901_v58  ;;  %2539 = vmatpush3.msra.mxu1 %v2952_v29 }
 0x8c7   :  { %1841 = vmatprep.subr.mxu0 %v2904_v60  ;;  %2540 = vmatprep.subr.mxu1 %v2756_v26 }
 0x8c8   :  { %1842 = vmatpush1.msra.mxu0 %v2910_v61  ;;  %2541 = vmatpush3.msra.mxu1 %v2956_v30 }
 0x8c9   :  { %1843 = vmatprep.subr.mxu0 %v2914_v63  ;;  %2542 = vmatprep.subr.mxu1 %v2756_v26 }
 0x8ca   :  { %1844 = vmatpush1.msra.mxu0 %v2918_v1  ;;  %1877 = vmatprep.mubr.f32.mxu0 %v2756_v26 }
 0x8cb   :  { %2543 = vmatpush3.msra.mxu1 %v2960_v31  ;;  %2544 = vmatprep.mubr.msk.f32.mxu1 %vm2757_vm1, %v2756_v26 }
 0x8cc   :  { %2034 = vmatprep.subr.mxu0 %v2890_v44  ;;  %2547 = vmatprep.subr.mxu1 %v2756_v26 }
 0x983   :  { %v1682_v25 = vpop.f32.mrf.mxu0  ;;  %v1753_v27 = vpop.f32.mrf.mxu1 }
 0x984   :  { %v1759_v32 = vadd.f32 %v1757_v24, %v1682_v25  ;;  %v1782_v33 = vrot.slane %v1753_v27, 6 }
 0x985   :  { %v1684_v34 = vpop.f32.mrf.mxu0  ;;  %v2535_v35 = vpop.f32.mrf.mxu1 }
 0x986   :  { %v1760_v36 = vmul.f32 %v1759_v32, %v2935_v12  ;;  %v1784_v37 = vadd.f32 %v1782_v33, %v1684_v34 }
 0x988   :  { %2597 = vtanh.f32 %v1760_v36  ;;  %v1785_v38 = vadd.f32 %v1784_v37, %v2991_v43 }
 0x98a   :  { %v1786_v39 = vmul.f32 %v1785_v38, %v2935_v12 }
 0x98c   :  { %2599 = vtanh.f32 %v1786_v39 }
 0x995   :  { %v2598_v44 = vpop.eup %2597 }
 0x996   :  { %v1762_v40 = vmul.f32 %v2598_v44, %v2935_v12 }
 0x998   :  { %v1763_v41 = vadd.f32 %v1762_v40, %v2939_v17 }
 0x999   :  { %v2600_v42 = vpop.eup %2599 }
 0x99a   :  { %1766 = vrot.lane.b32.xlu0 %v1763_v41, %s2759_s1  ;;  %v1788_v45 = vmul.f32 %v2600_v42, %v2935_v12  ;;  %v1764_v52 = vmul.f32 %v1763_v41, %v3006_v11 }
 0x99c   :  { %v1789_v46 = vadd.f32 %v1788_v45, %v2939_v17 }
 0x99e   :  { %1792 = vrot.lane.b32.xlu1 %v1789_v46, %s2759_s1  ;;  %v1790_v57 = vmul.f32 %v1789_v46, %v3009_v15 }
 0xa0c   :  { %v1767_v47 = vpop.permute.xlu0 %1766 }
 0xa0d   :  { %v1769_v48 = vmul.f32 %v1767_v47, %v1763_v41 }
 0xa0f   :  { %1771 = vrot.lane.b32.xlu0 %v1769_v48, %s2751_s10 }
 0xa10   :  { %v1793_v50 = vpop.permute.xlu1 %1792 }
 0xa11   :  { %v1795_v51 = vmul.f32 %v1793_v50, %v1789_v46 }
 0xa13   :  { %1797 = vrot.lane.b32.xlu1 %v1795_v51, %s2751_s10 }
 0xa81   :  { %v1772_v53 = vpop.permute.xlu0 %1771 }
 0xa82   :  { %v3053_v55 = vadd.f32 %v1772_v53, %v1764_v52 }
 0xa84   :  { %2601 = vtanh.f32 %v3053_v55 }
 0xa85   :  { %v1798_v59 = vpop.permute.xlu1 %1797 }
 0xa86   :  { %v3057_v62 = vadd.f32 %v1798_v59, %v1790_v57 }
 0xa88   :  { %2603 = vtanh.f32 %v3057_v62 }
 0xa91   :  { %v2602_v0 = vpop.eup %2601 }
 0xa92   :  { %1777 = vrot.lane.b32.xlu0 %v2602_v0, %s2759_s1 }
 0xa95   :  { %v2604_v2 = vpop.eup %2603 }
 0xa96   :  { %1803 = vrot.lane.b32.xlu1 %v2604_v2, %s2759_s1 }
 0xb04   :  { %v1778_v3 = vpop.permute.xlu0 %1777 }
 0xb05   :  { %v1780_v6 = vmul.f32 %v1778_v3, %v1763_v41 }
 0xb08   :  { %v1804_v4 = vpop.permute.xlu1 %1803 }
 0xb09   :  { %v1806_v7 = vmul.f32 %v1804_v4, %v1789_v46  ;;  %v2216_v4 = vld [vmem:[#allocation7 + $0xe90] sm:$0xff] }
 0xb0b   :  { %v1807_v8 = vsel %vm1043_vm3, %v1780_v6, %v1806_v7  ;;  %v3065_v9 = vsel %vm1043_vm3, %v2201_v5, %v1806_v7  ;;  %v2214_v5 = vld [vmem:[#allocation7 + $0xe70] sm:$0xff] }
 0xb0c   :  { %1809 = vrot.lane.b32.xlu0 %v1807_v8, %s2751_s10 }
 0xb7e   :  { %v1810_v11 = vpop.permute.xlu0 %1809 }
 0xb7f   :  { %2379 = vmatmul.mubr.msk.f32.vlgmr.msra.gmra.mxu0 %vm1126_vm5, %v1810_v11  ;;  %2545 = vmatmul.mubr.msk.f32.vlgmr.msra.gmra.mxu1 %vm1126_vm5, %v1810_v11 }
 0xb80   :  { %2035 = vmatpush1.msra.mxu0 %v2895_v54  ;;  %2548 = vmatpush3.msra.mxu1 %v2950_v28  ;;  %v1954_v54 = vrot.slane %v2933_v10, 6 }
 0xb81   :  { %2036 = vmatprep.subr.mxu0 %v2897_v56  ;;  %2549 = vmatprep.subr.mxu1 %v2756_v26 }
 0xb82   :  { %2037 = vmatpush1.msra.mxu0 %v2901_v58  ;;  %2550 = vmatpush3.msra.mxu1 %v2952_v29 }
 0xb83   :  { %2038 = vmatprep.subr.mxu0 %v2904_v60  ;;  %2551 = vmatprep.subr.mxu1 %v2756_v26 }
 0xb84   :  { %2039 = vmatpush1.msra.mxu0 %v2910_v61  ;;  %2552 = vmatpush3.msra.mxu1 %v2956_v30 }
 0xb85   :  { %2040 = vmatprep.subr.mxu0 %v2914_v63  ;;  %2553 = vmatprep.subr.mxu1 %v2756_v26 }
 0xb86   :  { %2041 = vmatpush1.msra.mxu0 %v2918_v1  ;;  %2074 = vmatprep.mubr.f32.mxu0 %v2756_v26 }
 0xb87   :  { %2554 = vmatpush3.msra.mxu1 %v2960_v31  ;;  %2555 = vmatprep.mubr.msk.f32.mxu1 %vm2757_vm1, %v2756_v26 }
 0xb88   :  { %2558 = vmatprep.subr.mxu0 %v2756_v26 }
 0xc3f   :  { %v1879_v56 = vpop.f32.mrf.mxu0  ;;  %v1950_v58 = vpop.f32.mrf.mxu1 }
 0xc40   :  { %v1956_v60 = vadd.f32 %v1954_v54, %v1879_v56  ;;  %v1979_v61 = vrot.slane %v1950_v58, 6  ;;  %v2217_v54 = vld [vmem:[#allocation7 + $0xea0] ss:$0 sm:$0xff] }
 0xc41   :  { %v1881_v63 = vpop.f32.mrf.mxu0  ;;  %v2546_v28 = vpop.f32.mrf.mxu1 }
 0xc42   :  { %v1957_v29 = vmul.f32 %v1956_v60, %v2935_v12  ;;  %v1981_v1 = vadd.f32 %v1979_v61, %v1881_v63 }
 0xc44   :  { %2605 = vtanh.f32 %v1957_v29  ;;  %v1982_v30 = vadd.f32 %v1981_v1, %v2991_v43 }
 0xc46   :  { %v1983_v31 = vmul.f32 %v1982_v30, %v2935_v12 }
 0xc48   :  { %2607 = vtanh.f32 %v1983_v31 }
 0xc51   :  { %v2606_v13 = vpop.eup %2605 }
 0xc52   :  { %v1959_v14 = vmul.f32 %v2606_v13, %v2935_v12 }
 0xc54   :  { %v1960_v10 = vadd.f32 %v1959_v14, %v2939_v17 }
 0xc55   :  { %v2608_v15 = vpop.eup %2607 }
 0xc56   :  { %1963 = vrot.lane.b32.xlu1 %v1960_v10, %s2759_s1  ;;  %v1985_v16 = vmul.f32 %v2608_v15, %v2935_v12  ;;  %v1961_v22 = vmul.f32 %v1960_v10, %v3053_v55 }
 0xc58   :  { %v1986_v49 = vadd.f32 %v1985_v16, %v2939_v17 }
 0xc5a   :  { %1989 = vrot.lane.b32.xlu0 %v1986_v49, %s2759_s1  ;;  %v1987_v25 = vmul.f32 %v1986_v49, %v3057_v62 }
 0xcc8   :  { %v1964_v18 = vpop.permute.xlu1 %1963 }
 0xcc9   :  { %v1966_v19 = vmul.f32 %v1964_v18, %v1960_v10 }
 0xccb   :  { %1968 = vrot.lane.b32.xlu1 %v1966_v19, %s2751_s10 }
 0xccc   :  { %v1990_v20 = vpop.permute.xlu0 %1989 }
 0xccd   :  { %v1992_v21 = vmul.f32 %v1990_v20, %v1986_v49 }
 0xccf   :  { %1994 = vrot.lane.b32.xlu0 %v1992_v21, %s2751_s10 }
 0xd3d   :  { %v1969_v23 = vpop.permute.xlu1 %1968 }
 0xd3e   :  { %v3101_v24 = vadd.f32 %v1969_v23, %v1961_v22 }
 0xd40   :  { %2609 = vtanh.f32 %v3101_v24 }
 0xd41   :  { %v1995_v27 = vpop.permute.xlu0 %1994 }
 0xd42   :  { %v1997_v32 = vadd.f32 %v1995_v27, %v1987_v25 }
 0xd44   :  { %2611 = vtanh.f32 %v1997_v32 }
 0xd4d   :  { %v2610_v33 = vpop.eup %2609 }
 0xd4e   :  { %1974 = vrot.lane.b32.xlu1 %v2610_v33, %s2759_s1 }
 0xd51   :  { %v2612_v34 = vpop.eup %2611 }
 0xd52   :  { %2000 = vrot.lane.b32.xlu0 %v2612_v34, %s2759_s1 }
 0xdc0   :  { %v1975_v35 = vpop.permute.xlu1 %1974 }
 0xdc1   :  { %v1977_v37 = vmul.f32 %v1975_v35, %v1960_v10 }
 0xdc4   :  { %v2001_v36 = vpop.permute.xlu0 %2000 }
 0xdc5   :  { %v2003_v38 = vmul.f32 %v2001_v36, %v1986_v49 }
 0xdc7   :  { %v2204_v39 = vrot.slane %v2003_v38, 6  ;;  %v2004_v44 = vsel %vm1043_vm3, %v1977_v37, %v2003_v38 }
 0xdc8   :  { %2006 = vrot.lane.b32.xlu1 %v2004_v44, %s2751_s10 }
 0xdc9   :  { %v2210_v40 = vsel %vm2209_vm9, %v3065_v9, %v2204_v39 }
 0xe3a   :  { %v2007_v41 = vpop.permute.xlu1 %2006 }
 0xe3b   :  { %2381 = vmatmul.mubr.msk.f32.vlgmr.msra.gmra.mxu0 %vm1126_vm5, %v2007_v41  ;;  %2556 = vmatmul.mubr.msk.f32.vlgmr.msra.gmra.mxu1 %vm1126_vm5, %v2007_v41 }
 0xe3c   :  { %2566 = vmatprep.mubr.msk.f32.mxu0 %vm2757_vm1, %v2756_v26  ;;  %2559 = vmatpush3.msra.mxu0 %v2216_v4 }
 0xe3d   :  { %2560 = vmatprep.subr.mxu0 %v2756_v26 }
 0xefb   :  { %v2076_v42 = vpop.f32.mrf.mxu0  ;;  %v2146_v45 = vpop.f32.mrf.mxu1 }
 0xefc   :  { %v2151_v46 = vrot.slane %v2146_v45, 6 }
 0xefd   :  { %v2077_v47 = vpop.f32.mrf.mxu0  ;;  %v2557_v48 = vpop.f32.mrf.mxu1 }
 0xefe   :  { %v2153_v50 = vadd.f32 %v2151_v46, %v2077_v47 }
 0xf00   :  { %v2154_v51 = vadd.f32 %v2153_v50, %v2991_v43  ;;  %v2215_v43 = vld [vmem:[#allocation7 + $0xe80] sm:$0xff] }
 0xf01   :  { %2561 = vmatpush3.msra.mxu0 %v2215_v43 }
 0xf02   :  { %v2155_v52 = vmul.f32 %v2154_v51, %v2935_v12  ;;  %2562 = vmatprep.subr.mxu0 %v2756_v26 }
 0xf03   :  { %2563 = vmatpush3.msra.mxu0 %v2214_v5 }
 0xf04   :  { %2613 = vtanh.f32 %v2155_v52  ;;  %2564 = vmatprep.subr.mxu0 %v2756_v26 }
 0xf11   :  { %v2614_v53 = vpop.eup %2613 }
 0xf12   :  { %v2157_v55 = vmul.f32 %v2614_v53, %v2935_v12  ;;  %v2213_v12 = vld [vmem:[#allocation7 + $0xe60] sm:$0xff] }
 0xf13   :  { %2565 = vmatpush3.msra.mxu0 %v2213_v12 }
 0xf14   :  { %v2158_v57 = vadd.f32 %v2157_v55, %v2939_v17 }
 0xf16   :  { %2161 = vrot.lane.b32.xlu0 %v2158_v57, %s2759_s1  ;;  %v2159_v0 = vmul.f32 %v2158_v57, %v1997_v32 }
 0xf88   :  { %v2162_v59 = vpop.permute.xlu0 %2161 }
 0xf89   :  { %v2164_v62 = vmul.f32 %v2162_v59, %v2158_v57 }
 0xf8b   :  { %2166 = vrot.lane.b32.xlu1 %v2164_v62, %s2751_s10 }
 0xffd   :  { %v2167_v2 = vpop.permute.xlu1 %2166 }
 0xffe   :  { %v2169_v3 = vadd.f32 %v2167_v2, %v2159_v0 }
0x1000   :  { %2615 = vtanh.f32 %v2169_v3 }
0x100d   :  { %v2616_v17 = vpop.eup %2615 }
0x100e   :  { %2172 = vrot.lane.b32.xlu0 %v2616_v17, %s2759_s1 }
0x1080   :  { %v2173_v6 = vpop.permute.xlu0 %2172 }
0x1081   :  { %v2175_v7 = vmul.f32 %v2173_v6, %v2158_v57 }
0x1083   :  { %v2206_v8 = vrot.slane %v2175_v7, 4 }
0x1085   :  { %v2212_v9 = vsel %vm2211_vm10, %v2210_v40, %v2206_v8 }
0x1086   :  { %2219 = vrot.lane.b32.xlu1 %v2212_v9, %s2751_s10 }
0x10f8   :  { %v2220_v11 = vpop.permute.xlu1 %2219 }
0x10f9   :  { %2567 = vmatmul.mubr.msk.f32.vlgmr.msra.gmra.mxu0 %vm1126_vm5, %v2220_v11 }
0x11b9   :  { %v2289_v56 = vpop.f32.mrf.mxu0 }
0x11ba   :  { %v2290_v58 = vadd.f32 %v2289_v56, %v2217_v54 }
0x11bb   :  { %v2568_v26 = vpop.f32.mrf.mxu0 }
0x11bc   :  { %2294 = vst.msk [vmem:[%s3160_s5] sm:$0xff] %vm2293_vm11, %v2290_v58  ;;  %v2296_v60 = vsel %vm2295_vm12, %v2290_v58, -inf  ;;  %s2761_s5 = smov 127  }
0x11bd   :  { %2297 = vmax.xlane.f32.xlu0 %v2296_v60 }
0x11d3   :  { %2177 = vrot.lane.b32.xlu0 %v1977_v37, %s2751_s10 }
0x11d7   :  { %2183 = vrot.lane.b32.xlu0 %v3101_v24, %s2760_s2 }
0x11db   :  { %2195 = vrot.lane.b32.xlu0 %v2169_v3, %s2760_s2 }
0x1246   :  { %v2298_v61 = vpop.xlane.xlu0 %2297 }
0x1247   :  { %v2299_v63 = vsub.f32 %v2290_v58, %v2298_v61 }
0x1249   :  { %v2300_v28 = vmul.f32 1.442695, %v2299_v63 }
0x124a   :  { %v2178_v29 = vpop.permute.xlu0 %2177 }
0x124b   :  { %2617 = vpow2.f32 %v2300_v28  ;;  %2181 = vst.msk [vmem:[#allocation9] sm:$0x3] %vm2180_vm13, %v2178_v29 }
0x124e   :  { %v2184_v1 = vpop.permute.xlu0 %2183 }
0x124f   :  { %2186 = vst.msk [vmem:[#allocation11] sm:$0x3] %vm2180_vm13, %v2184_v1 }
0x1252   :  { %v2196_v30 = vpop.permute.xlu0 %2195 }
0x1253   :  { %2199 = vst.msk [vmem:[#allocation11] sm:$0xc] %vm2192_vm14, %v2196_v30 }
0x1258   :  { %v2618_v31 = vpop.eup %2617 }
0x1259   :  { %2303 = vrot.lane.b32.xlu1 %v2618_v31, %s2761_s5 }
0x12cb   :  { %v2304_v13 = vpop.permute.xlu1 %2303 }
0x12cc   :  { %v2307_v14 = vsel %vm2306_vm15, %v2304_v13, 0.0 }
0x12cd   :  { %2308 = vadd.xlane.f32.xlu1 %v2307_v14 }
0x12de   :  { %2188 = vrot.lane.b32.xlu1 %v2175_v7, %s2751_s10 }
0x1356   :  { %v2309_v10 = vpop.xlane.xlu1 %2308 }
0x1357   :  { %2619 = vrcp.f32 %v2309_v10 }
0x135a   :  { %v2189_v15 = vpop.permute.xlu1 %2188 }
0x135b   :  { %2193 = vst.msk [vmem:[#allocation9] sm:$0xc] %vm2192_vm14, %v2189_v15 }
0x135c   :  { %2692 = shalt.err (!%p2689_p5)
}
0x135d   :  { %2340 = dma.vmem_to_hbm [thread:$0]  %s2335_s25, 64, %s3162_s7, [#allocation10], %s2751_s10, %s2751_s10, %s2752_s11  }
0x135e   :  { %s2701_s9 = scalar_lea.vmem %s2347_s27, 64  ;;  %p2706_p7 = scmp.lt.s32.totalorder %s2347_s27, %s2347_s27 }
0x135f   :  { %p2702_p6 = scmp.ne.s32.totalorder %s2347_s27, %s2701_s9  ;;  %p2707_p8 = scmp.lt.s32.totalorder %s2701_s9, %s2701_s9 }
0x1361   :  { %p2708_p9 = por %p2707_p8, %p2706_p7 }
0x1363   :  { %p2709_p10 = pnand %p2708_p9, %p2702_p6 }
0x1365   :  { %2712 = shalt.err (!%p2709_p10)
}
0x1366   :  { %2352 = dma.vmem_to_hbm [thread:$0]  %s2347_s27, 64, %s3163_s8, [#allocation10], %s2751_s10, %s2751_s10, %s2752_s11   ;;  %v2620_v16 = vpop.eup %2619 }
0x1367   :  { %v2311_v49 = vmul.f32 %v2620_v16, %v2618_v31  ;;  %s2764_s7 = smov [#allocation8]  }
0x1368   :  { %s2325_s14 = sshll.u32 %s2764_s7, 4  ;;  %s2326_s14 = int_to_ptr.vmem [resolvable:$true] %s2325_s14 }
0x1369   :  { %2313 = vrot.lane.b32.xlu1 %v2311_v49, %s2761_s5  ;;  %s2721_s15 = scalar_lea.vmem %s2326_s14, 128  ;;  %p2726_p12 = scmp.lt.s32.totalorder %s2326_s14, %s2326_s14 }
0x136a   :  { %p2722_p11 = scmp.ne.s32.totalorder %s2326_s14, %s2721_s15  ;;  %p2727_p13 = scmp.lt.s32.totalorder %s2721_s15, %s2721_s15 }
0x136c   :  { %p2728_p0 = por %p2727_p13, %p2726_p12 }
0x136e   :  { %p2729_p1 = pnand %p2728_p0, %p2722_p11 }
0x13db   :  { %v2314_v18 = vpop.permute.xlu1 %2313 }
0x13dc   :  { %2316 = vst.msk [vmem:[#allocation8] sm:$0xff] %vm2306_vm15, %v2314_v18 }
0x13dd   :  { %2732 = shalt.err (!%p2729_p1)
}
0x13de   :  { %2328 = dma.vmem_to_hbm [thread:$0]  %s2326_s14, 128, %s3161_s6, [#allocation4]  }
0x13df   :  { %2745 = dma.done.wait [#allocation4], 128  }
0x13e0   :  { %2746 = vsyncadd [#allocation4], 4294967168 }
0x13e1   :  { %2747 = dma.done.wait [#allocation10], 128  }
0x13e2   :  { %2748 = vsyncadd [#allocation10], 4294967168 }
0x13e3   :  { %2364 = vsyncpa [#allocation3], 1 }
0x13e4   :  { %2365 = vsyncpa [#allocation6], 1 }
0x13e5   :  { %2366 = vsyncpa [#allocation4], 1 }
0x13e6   :  { %2367 = vsyncpa [#allocation10], 1 }

</bundles_post_ra>
